<compile_context>
chip_gen: v7x
topology: tpu7x:2x2x1
jax: 0.10.0
libtpu: 0.0.40
codegen_flags: <defaults>
</compile_context>

<pallas_src>
import math
import functools

import jax
import jax.numpy as jnp
import numpy as np
from jax import lax
from jax.experimental import pallas as pl
from jax.experimental.pallas import tpu as pltpu

LOG_EPS = -1000.0  # log-domain "zero"


def _round_up(x, m):
    return (x + m - 1) // m * m


# ----------------------------------------------------------------------------------
# Kernel 1: energy[b,i,j] = log_sigmoid(v . tanh(Wt x_text[i] + Wm x_mel[j] + b_m)
#                                        + b_v + noise[i,j]),  masked to LOG_EPS
# ----------------------------------------------------------------------------------
def _energy_kernel(tlen_ref, mlen_ref, text_ref, mel_ref, noise_ref,
                   wt_ref, wm_ref, bm_ref, v_ref, out_ref, *, TI, Jp):
    b = pl.program_id(0)
    ib = pl.program_id(1)
    tl = tlen_ref[b]
    ml = mlen_ref[b]

    tt = text_ref[0]      # (TI, Dt)   natural layout
    mm = mel_ref[0]       # (Jp, Dm)   natural layout

    # Projections, contracting the feature axis of both operands (MXU).
    ptT = lax.dot_general(wt_ref[...], tt, (((1,), (1,)), ((), ())),
                          preferred_element_type=jnp.float32)              # (A, TI)
    pmT = lax.dot_general(wm_ref[...], mm, (((1,), (1,)), ((), ())),
                          preferred_element_type=jnp.float32) + bm_ref[...]  # (A, Jp)

    v = v_ref[...]                                           # (1, A)
    lane = lax.broadcasted_iota(jnp.int32, (1, Jp), 1)

    for r in range(TI):
        col = ptT[:, r:r + 1]                                # (A, 1) static lane slice
        h = jnp.tanh(col + pmT)                              # (A, Jp)
        e = jnp.dot(v, h, preferred_element_type=jnp.float32)  # (1, Jp)
        z = e + noise_ref[0, r:r + 1, :]                     # noise has v-bias folded in
        # energy = -softplus(-z) == log_sigmoid(z), numerically stable form
        ls = jnp.minimum(z, 0.0) - jnp.log(1.0 + jnp.exp(-jnp.abs(z)))
        gi = ib * TI + r
        ok = (gi < tl) & (lane < ml)                         # alignment mask, in-kernel
        out_ref[0, r:r + 1, :] = jnp.where(ok, ls, LOG_EPS)


def _compute_energy(tlen, mlen, text_p, mel_p, noise_p, params, *, TI=8):
    B, Ip, Dt = text_p.shape
    _, Jp, Dm = mel_p.shape
    A = params["w_text"].shape[0]
    n_ib = Ip // TI
    kernel = functools.partial(_energy_kernel, TI=TI, Jp=Jp)
    grid_spec = pltpu.PrefetchScalarGridSpec(
        num_scalar_prefetch=2,
        grid=(B, n_ib),
        in_specs=[
            pl.BlockSpec((1, TI, Dt), lambda b, ib, tl, ml: (b, ib, 0)),
            pl.BlockSpec((1, Jp, Dm), lambda b, ib, tl, ml: (b, 0, 0)),
            pl.BlockSpec((1, TI, Jp), lambda b, ib, tl, ml: (b, ib, 0)),
            pl.BlockSpec((A, Dt), lambda b, ib, tl, ml: (0, 0)),
            pl.BlockSpec((A, Dm), lambda b, ib, tl, ml: (0, 0)),
            pl.BlockSpec((A, 1), lambda b, ib, tl, ml: (0, 0)),
            pl.BlockSpec((1, A), lambda b, ib, tl, ml: (0, 0)),
        ],
        out_specs=pl.BlockSpec((1, TI, Jp), lambda b, ib, tl, ml: (b, ib, 0)),
    )
    return pl.pallas_call(
        kernel,
        out_shape=jax.ShapeDtypeStruct((B, Ip, Jp), jnp.float32),
        grid_spec=grid_spec,
        compiler_params=pltpu.CompilerParams(
            dimension_semantics=("parallel", "parallel"),
            vmem_limit_bytes=48 * 1024 * 1024),
    )(tlen, mlen, text_p, mel_p, noise_p,
      params["w_text"], params["w_mel"], params["b_mel"], params["v_w"])


# ----------------------------------------------------------------------------------
# Kernel 2 (fused): conditional boundary probs + boundary DP + interval prob.
#   For each text token i (sequential):
#     e4[d,k]      = energy[i, k+d]                                   (duration view)
#     lcp[d,k]     = e4 - logsumexp_d(e4)          (= log P(B_{i+1}=k+d+1 | B_i=k))
#     geq[d,k]     = logsumexp_{d'>=d} lcp[d',k]
#     out[i,j]     = exp( logsumexp_d( lb[i, j-d] + geq[d, j-d] ) ) * mask
#     lb[i+1,j]    = logsumexp_d( lb[i, j-d-1] + lcp[d, j-d-1] ),  masked j >= i+1
#   Last valid token row is force-assigned to exp(prefix-logsumexp_k<=j lb[i_last,k]).
# ----------------------------------------------------------------------------------
def _dp_kernel(tlen_ref, mlen_ref, energy_ref, out_ref, lb_ref, e4_ref, skew_ref,
               *, Ip, Jp, D, Dp):
    b = pl.program_id(0)
    tl = tlen_ref[b]
    ml = mlen_ref[b]

    lane1 = lax.broadcasted_iota(jnp.int32, (1, Jp), 1)
    lane2 = lax.broadcasted_iota(jnp.int32, (Dp, Jp), 1)    # k index
    sub2 = lax.broadcasted_iota(jnp.int32, (Dp, Jp), 0)     # d index
    rrow = lax.broadcasted_iota(jnp.int32, (Dp, Dp), 0)
    ccol = lax.broadcasted_iota(jnp.int32, (Dp, Dp), 1)
    U = (ccol >= rrow).astype(jnp.float32)                  # upper-triangular ones

    lb_ref[...] = jnp.where(lane1 == 0, 0.0, LOG_EPS)       # log P(B_0 = j)
    e4_ref[...] = jnp.full((Dp, Jp), LOG_EPS, jnp.float32)
    skew_ref[...] = jnp.full((Dp, Jp), LOG_EPS, jnp.float32)  # rows >= D stay LOG_EPS

    def body(i, carry):
        e_row = energy_ref[0, pl.ds(i, 1), :]               # (1, Jp)
        lb_cur = lb_ref[...]                                 # (1, Jp) = log P(B_i = k)

        # ---- e4[d, k] = energy[i, k + d]  (lane roll per duration row) ----
        e4_ref[0:1, :] = e_row
        for d in range(1, D):
            e4_ref[d:d + 1, :] = pltpu.roll(e_row, Jp - d, axis=1)

        # validity mask directly from indices (no rolled mel-mask copies)
        valid = (sub2 < D) & ((lane2 + sub2) < ml) & (lane2 >= i) & (i < tl)
        e4m = jnp.where(valid, e4_ref[...], LOG_EPS)

        # ---- conditional prob: normalize over duration d ----
        mx = jnp.max(e4m, axis=0, keepdims=True)
        zden = mx + jnp.log(jnp.sum(jnp.exp(e4m - mx), axis=0, keepdims=True))
        lcp = jnp.where(valid, e4m - zden, LOG_EPS)          # (Dp, Jp)

        # ---- geq[d,k] = logsumexp_{d'>=d} lcp[d',k]: exp + triangular matmul + log
        # (all lcp <= 0, invalid entries exp to 0; floor avoids -inf in later maxes)
        pexp = jnp.exp(lcp)
        cum = jnp.dot(U, pexp, preferred_element_type=jnp.float32)
        geq = jnp.where(valid, jnp.log(jnp.maximum(cum, 1e-30)), LOG_EPS)

        amrow = ((lane1 < ml) & (i < tl)).astype(jnp.float32)

        # ---- interval prob for output row i ----
        Y = lb_cur + geq                                     # (Dp, Jp)
        skew_ref[0:1, :] = Y[0:1, :]
        for d in range(1, D):
            rd = pltpu.roll(Y[d:d + 1, :], d, axis=1)        # place at j = k + d
            skew_ref[d:d + 1, :] = jnp.where(lane1 >= d, rd, LOG_EPS)
        sk = skew_ref[...]
        mxs = jnp.max(sk, axis=0, keepdims=True)
        log_row = mxs + jnp.log(jnp.sum(jnp.exp(sk - mxs), axis=0, keepdims=True))
        out_ref[0, pl.ds(i, 1), :] = jnp.exp(log_row) * amrow

        # ---- force-assign last valid text token: P(B_{i_last} <= j) ----
        @pl.when(i == tl - 1)
        def _():
            racc = lb_cur
            s = 1
            while s < Jp:                                    # log-domain prefix scan
                sh = jnp.where(lane1 >= s, pltpu.roll(racc, s, axis=1), LOG_EPS)
                m2 = jnp.maximum(racc, sh)
                racc = m2 + jnp.log(jnp.exp(racc - m2) + jnp.exp(sh - m2))
                s *= 2
            out_ref[0, pl.ds(i, 1), :] = jnp.exp(racc) * amrow

        # ---- boundary DP step: lb[i+1] ----
        Mt = lb_cur + lcp                                    # (Dp, Jp)
        for d in range(D):
            rd = pltpu.roll(Mt[d:d + 1, :], d + 1, axis=1)   # place at j = k + d + 1
            skew_ref[d:d + 1, :] = jnp.where(lane1 >= d + 1, rd, LOG_EPS)
        sk2 = skew_ref[...]
        mx2 = jnp.max(sk2, axis=0, keepdims=True)
        srow = mx2 + jnp.log(jnp.sum(jnp.exp(sk2 - mx2), axis=0, keepdims=True))
        lb_ref[...] = jnp.where(lane1 >= i + 1, srow, LOG_EPS)
        return carry

    lax.fori_loop(0, Ip, body, 0)


def _compute_soft_alignment(tlen, mlen, energy, D):
    B, Ip, Jp = energy.shape
    Dp = _round_up(max(D, 1), 8)
    kernel = functools.partial(_dp_kernel, Ip=Ip, Jp=Jp, D=D, Dp=Dp)
    grid_spec = pltpu.PrefetchScalarGridSpec(
        num_scalar_prefetch=2,
        grid=(B,),
        in_specs=[pl.BlockSpec((1, Ip, Jp), lambda b, tl, ml: (b, 0, 0))],
        out_specs=pl.BlockSpec((1, Ip, Jp), lambda b, tl, ml: (b, 0, 0)),
        scratch_shapes=[pltpu.VMEM((1, Jp), jnp.float32),    # lb row carry
                        pltpu.VMEM((Dp, Jp), jnp.float32),   # e4
                        pltpu.VMEM((Dp, Jp), jnp.float32)],  # diagonal skew buffer
    )
    return pl.pallas_call(
        kernel,
        out_shape=jax.ShapeDtypeStruct((B, Ip, Jp), jnp.float32),
        grid_spec=grid_spec,
        compiler_params=pltpu.CompilerParams(
            dimension_semantics=("parallel",),
            vmem_limit_bytes=48 * 1024 * 1024),
    )(tlen, mlen, energy)


# ----------------------------------------------------------------------------------
# Parameters (deterministic, synthetic; mirrors LinearNorm shapes in __init__)
# ----------------------------------------------------------------------------------
def init_mobo_params(key, text_channels, mel_channels, attention_dim):
    k1, k2, k3 = jax.random.split(key, 3)
    gain = 5.0 / 3.0  # tanh gain (xavier_uniform)

    def xavier(k, out_f, in_f, g):
        lim = g * math.sqrt(6.0 / (in_f + out_f))
        return jax.random.uniform(k, (out_f, in_f), jnp.float32, -lim, lim)

    w_mel = xavier(k1, attention_dim, mel_channels, gain)            # (A, D_mel)
    b_mel = jnp.zeros((attention_dim, 1), jnp.float32)               # (A, 1)
    w_text = xavier(k2, attention_dim, text_channels, gain)          # (A, D_text)
    v_raw = jax.random.normal(k3, (1, attention_dim), jnp.float32)
    v_w = v_raw / jnp.linalg.norm(v_raw) * math.sqrt(1.0 / attention_dim)  # weight-norm
    v_b = jnp.zeros((1, 1), jnp.float32)
    return dict(w_text=w_text, w_mel=w_mel, b_mel=b_mel, v_w=v_w, v_b=v_b)


# ----------------------------------------------------------------------------------
# Forward (direction = ['forward'])
# ----------------------------------------------------------------------------------
def mobo_aligner_forward(params, text_hiddens, mel_hiddens, text_mask, mel_mask,
                         noise_key, noise_scale=2.0, max_dur=10, validate=True):
    B, I, _ = text_hiddens.shape
    _, J, _ = mel_hiddens.shape
    D = int(max_dur)

    tlen = jnp.sum(text_mask.astype(jnp.int32), axis=1)
    mlen = jnp.sum(mel_mask.astype(jnp.int32), axis=1)

    # check_parameter_validity (host-side only; silently skipped under tracing/jit)
    if validate:
        try:
            tl_np, ml_np = np.asarray(tlen), np.asarray(mlen)
        except Exception:
            tl_np = None
        if tl_np is not None:
            if not np.all(tl_np <= ml_np):
                raise ValueError("text longer than mel is not allowed")
            if not np.all(tl_np * D >= ml_np):
                raise ValueError("mel too long for max_dur")

    Ip = _round_up(I, 8)        # sublane-aligned text axis
    Jp = _round_up(J, 128)      # lane-dense mel axis
    assert D < Jp, "max_dur must be smaller than the (padded) mel length"

    text_p = jnp.pad(text_hiddens.astype(jnp.float32), ((0, 0), (0, Ip - I), (0, 0)))
    mel_p = jnp.pad(mel_hiddens.astype(jnp.float32), ((0, 0), (0, Jp - J), (0, 0)))

    noise = jax.random.normal(noise_key, (B, I, J), jnp.float32) * noise_scale
    noise = noise + params["v_b"].reshape(())      # fold the v-layer bias (scalar)
    noise_p = jnp.pad(noise, ((0, 0), (0, Ip - I), (0, Jp - J)))

    energy = _compute_energy(tlen, mlen, text_p, mel_p, noise_p, params)   # (B, Ip, Jp)
    soft = _compute_soft_alignment(tlen, mlen, energy, D)                  # (B, Ip, Jp)
    return soft[:, :I, :J]


if __name__ == "__main__":
    key = jax.random.PRNGKey(0)
    kp, kt, km, kn = jax.random.split(key, 4)

    B, I, J = 2, 8, 16
    text_channels, mel_channels, attention_dim = 16, 24, 32

    params = init_mobo_params(kp, text_channels, mel_channels, attention_dim)
    text_hiddens = jax.random.normal(kt, (B, I, text_channels), jnp.float32)
    mel_hiddens = jax.random.normal(km, (B, J, mel_channels), jnp.float32)

    text_lens = jnp.array([8, 6], dtype=jnp.int32)
    mel_lens = jnp.array([16, 12], dtype=jnp.int32)
    text_mask = jnp.arange(I)[None, :] < text_lens[:, None]
    mel_mask = jnp.arange(J)[None, :] < mel_lens[:, None]

    soft_alignment = mobo_aligner_forward(
        params, text_hiddens, mel_hiddens, text_mask, mel_mask, kn,
        noise_scale=2.0, max_dur=10)
    soft_alignment = jax.block_until_ready(soft_alignment)

    assert soft_alignment.shape == (B, I, J)
    assert bool(jnp.all(jnp.isfinite(soft_alignment)))
    print("KERNEL_OK")
</pallas_src>

<mosaic_0001>
module attributes {stable_mosaic.version = 11 : i64} {
  func.func @_energy_kernel(%arg0: i32, %arg1: i32, %arg2: memref<2xi32, #tpu.memory_space<smem>>, %arg3: memref<2xi32, #tpu.memory_space<smem>>, %arg4: memref<1x8x16xf32, #tpu.memory_space<vmem>>, %arg5: memref<1x128x24xf32, #tpu.memory_space<vmem>>, %arg6: memref<1x8x128xf32, #tpu.memory_space<vmem>>, %arg7: memref<32x16xf32, #tpu.memory_space<vmem>>, %arg8: memref<32x24xf32, #tpu.memory_space<vmem>>, %arg9: memref<32x1xf32, #tpu.memory_space<vmem>>, %arg10: memref<1x32xf32, #tpu.memory_space<vmem>>, %arg11: memref<1x8x128xf32, #tpu.memory_space<vmem>>) attributes {dimension_semantics = [#tpu.dimension_semantics<parallel>, #tpu.dimension_semantics<parallel>], iteration_bounds = array<i64: 2, 1>, scalar_prefetch = 2 : i64, scratch_operands = 0 : i64, tpu.core_type = #tpu.core_type<tc>, window_params = [{transform_indices = @transform_0, window_bounds = array<i64: 1, 8, 16>}, {transform_indices = @transform_1, window_bounds = array<i64: 1, 128, 24>}, {transform_indices = @transform_2, window_bounds = array<i64: 1, 8, 128>}, {pipeline_mode = #tpu.pipeline_mode<synchronous>, transform_indices = @transform_3, window_bounds = array<i64: 32, 16>}, {pipeline_mode = #tpu.pipeline_mode<synchronous>, transform_indices = @transform_4, window_bounds = array<i64: 32, 24>}, {pipeline_mode = #tpu.pipeline_mode<synchronous>, transform_indices = @transform_5, window_bounds = array<i64: 32, 1>}, {pipeline_mode = #tpu.pipeline_mode<synchronous>, transform_indices = @transform_6, window_bounds = array<i64: 1, 32>}, {transform_indices = @transform_7, window_bounds = array<i64: 1, 8, 128>}]} {
    %0 = arith.index_cast %arg0 : i32 to index
    %1 = memref.load %arg2[%0] : memref<2xi32, #tpu.memory_space<smem>>
    %2 = arith.index_cast %arg0 : i32 to index
    %3 = memref.load %arg3[%2] : memref<2xi32, #tpu.memory_space<smem>>
    %c0 = arith.constant 0 : index
    %c0_0 = arith.constant 0 : index
    %c0_1 = arith.constant 0 : index
    %4 = vector.load %arg4[%c0, %c0_0, %c0_1] : memref<1x8x16xf32, #tpu.memory_space<vmem>>, vector<1x8x16xf32>
    %5 = vector.shape_cast %4 : vector<1x8x16xf32> to vector<8x16xf32>
    %c0_2 = arith.constant 0 : index
    %c0_3 = arith.constant 0 : index
    %c0_4 = arith.constant 0 : index
    %6 = vector.load %arg5[%c0_2, %c0_3, %c0_4] : memref<1x128x24xf32, #tpu.memory_space<vmem>>, vector<1x128x24xf32>
    %7 = vector.shape_cast %6 : vector<1x128x24xf32> to vector<128x24xf32>
    %c0_5 = arith.constant 0 : index
    %c0_6 = arith.constant 0 : index
    %8 = vector.load %arg7[%c0_5, %c0_6] : memref<32x16xf32, #tpu.memory_space<vmem>>, vector<32x16xf32>
    %cst = arith.constant dense<0.000000e+00> : vector<32x8xf32>
    %9 = tpu.matmul %8, %5, %cst {dimension_numbers = #tpu.dot_dimension_numbers<[1], [1], [0], [0], [0, 0, 1, 0], [], []>} : vector<32x16xf32>, vector<8x16xf32>, vector<32x8xf32> -> vector<32x8xf32>
    %c0_7 = arith.constant 0 : index
    %c0_8 = arith.constant 0 : index
    %10 = vector.load %arg8[%c0_7, %c0_8] : memref<32x24xf32, #tpu.memory_space<vmem>>, vector<32x24xf32>
    %cst_9 = arith.constant dense<0.000000e+00> : vector<32x128xf32>
    %11 = tpu.matmul %10, %7, %cst_9 {dimension_numbers = #tpu.dot_dimension_numbers<[1], [1], [0], [0], [0, 0, 1, 0], [], []>} : vector<32x24xf32>, vector<128x24xf32>, vector<32x128xf32> -> vector<32x128xf32>
    %c0_10 = arith.constant 0 : index
    %c0_11 = arith.constant 0 : index
    %12 = vector.load %arg9[%c0_10, %c0_11] : memref<32x1xf32, #tpu.memory_space<vmem>>, vector<32x1xf32>
    %13 = vector.broadcast %12 : vector<32x1xf32> to vector<32x128xf32>
    %14 = arith.addf %11, %13 : vector<32x128xf32>
    %c0_12 = arith.constant 0 : index
    %c0_13 = arith.constant 0 : index
    %15 = vector.load %arg10[%c0_12, %c0_13] : memref<1x32xf32, #tpu.memory_space<vmem>>, vector<1x32xf32>
    %16 = tpu.iota {dimensions = array<i32: 1>} : vector<1x128xi32>
    %17 = vector.extract_strided_slice %9 {offsets = [0, 0], sizes = [32, 1], strides = [1, 1]} : vector<32x8xf32> to vector<32x1xf32>
    %18 = vector.broadcast %17 : vector<32x1xf32> to vector<32x128xf32>
    %19 = arith.addf %18, %14 : vector<32x128xf32>
    %20 = math.tanh %19 : vector<32x128xf32>
    %cst_14 = arith.constant dense<0.000000e+00> : vector<1x128xf32>
    %21 = tpu.matmul %15, %20, %cst_14 {dimension_numbers = #tpu.dot_dimension_numbers<[1], [0], [0], [1], [0, 0, 1, 1], [], []>} : vector<1x32xf32>, vector<32x128xf32>, vector<1x128xf32> -> vector<1x128xf32>
    %c0_15 = arith.constant 0 : index
    %c0_16 = arith.constant 0 : index
    %c0_17 = arith.constant 0 : index
    %22 = vector.load %arg6[%c0_15, %c0_16, %c0_17] : memref<1x8x128xf32, #tpu.memory_space<vmem>>, vector<1x1x128xf32>
    %23 = vector.shape_cast %22 : vector<1x1x128xf32> to vector<1x128xf32>
    %24 = arith.addf %21, %23 : vector<1x128xf32>
    %cst_18 = arith.constant 0.000000e+00 : f32
    %25 = vector.broadcast %cst_18 : f32 to vector<1x128xf32>
    %26 = arith.minimumf %24, %25 : vector<1x128xf32>
    %27 = math.absf %24 : vector<1x128xf32>
    %cst_19 = arith.constant 0.000000e+00 : f32
    %28 = vector.broadcast %cst_19 : f32 to vector<1x128xf32>
    %29 = arith.subf %28, %27 : vector<1x128xf32>
    %30 = math.exp %29 : vector<1x128xf32>
    %cst_20 = arith.constant 1.000000e+00 : f32
    %31 = vector.broadcast %cst_20 : f32 to vector<1x128xf32>
    %32 = arith.addf %31, %30 : vector<1x128xf32>
    %33 = math.log %32 : vector<1x128xf32>
    %34 = arith.subf %26, %33 : vector<1x128xf32>
    %c8_i32 = arith.constant 8 : i32
    %35 = arith.muli %arg1, %c8_i32 : i32
    %c0_i32 = arith.constant 0 : i32
    %36 = arith.addi %35, %c0_i32 : i32
    %37 = arith.cmpi slt, %36, %1 : i32
    %38 = vector.broadcast %3 : i32 to vector<1x128xi32>
    %39 = arith.cmpi slt, %16, %38 : vector<1x128xi32>
    %40 = vector.broadcast %37 : i1 to vector<1x128xi1>
    %41 = arith.andi %40, %39 : vector<1x128xi1>
    %cst_21 = arith.constant -1.000000e+03 : f32
    %42 = vector.broadcast %cst_21 : f32 to vector<1x128xf32>
    %43 = arith.select %41, %34, %42 : vector<1x128xi1>, vector<1x128xf32>
    %c0_22 = arith.constant 0 : index
    %c0_23 = arith.constant 0 : index
    %c0_24 = arith.constant 0 : index
    %44 = vector.load %arg11[%c0_22, %c0_23, %c0_24] : memref<1x8x128xf32, #tpu.memory_space<vmem>>, vector<1x1x128xf32>
    %45 = vector.shape_cast %44 : vector<1x1x128xf32> to vector<1x128xf32>
    %46 = vector.shape_cast %43 : vector<1x128xf32> to vector<1x1x128xf32>
    tpu.vector_store %arg11[%c0_22, %c0_23, %c0_24], %46 {strides = array<i32>} : memref<1x8x128xf32, #tpu.memory_space<vmem>>, vector<1x1x128xf32>,
    %47 = vector.extract_strided_slice %9 {offsets = [0, 1], sizes = [32, 1], strides = [1, 1]} : vector<32x8xf32> to vector<32x1xf32>
    %48 = vector.broadcast %47 : vector<32x1xf32> to vector<32x128xf32>
    %49 = arith.addf %48, %14 : vector<32x128xf32>
    %50 = math.tanh %49 : vector<32x128xf32>
    %cst_25 = arith.constant dense<0.000000e+00> : vector<1x128xf32>
    %51 = tpu.matmul %15, %50, %cst_25 {dimension_numbers = #tpu.dot_dimension_numbers<[1], [0], [0], [1], [0, 0, 1, 1], [], []>} : vector<1x32xf32>, vector<32x128xf32>, vector<1x128xf32> -> vector<1x128xf32>
    %c0_26 = arith.constant 0 : index
    %c1 = arith.constant 1 : index
    %c0_27 = arith.constant 0 : index
    %52 = vector.load %arg6[%c0_26, %c1, %c0_27] : memref<1x8x128xf32, #tpu.memory_space<vmem>>, vector<1x1x128xf32>
    %53 = vector.shape_cast %52 : vector<1x1x128xf32> to vector<1x128xf32>
    %54 = arith.addf %51, %53 : vector<1x128xf32>
    %cst_28 = arith.constant 0.000000e+00 : f32
    %55 = vector.broadcast %cst_28 : f32 to vector<1x128xf32>
    %56 = arith.minimumf %54, %55 : vector<1x128xf32>
    %57 = math.absf %54 : vector<1x128xf32>
    %cst_29 = arith.constant 0.000000e+00 : f32
    %58 = vector.broadcast %cst_29 : f32 to vector<1x128xf32>
    %59 = arith.subf %58, %57 : vector<1x128xf32>
    %60 = math.exp %59 : vector<1x128xf32>
    %cst_30 = arith.constant 1.000000e+00 : f32
    %61 = vector.broadcast %cst_30 : f32 to vector<1x128xf32>
    %62 = arith.addf %61, %60 : vector<1x128xf32>
    %63 = math.log %62 : vector<1x128xf32>
    %64 = arith.subf %56, %63 : vector<1x128xf32>
    %c8_i32_31 = arith.constant 8 : i32
    %65 = arith.muli %arg1, %c8_i32_31 : i32
    %c1_i32 = arith.constant 1 : i32
    %66 = arith.addi %65, %c1_i32 : i32
    %67 = arith.cmpi slt, %66, %1 : i32
    %68 = vector.broadcast %3 : i32 to vector<1x128xi32>
    %69 = arith.cmpi slt, %16, %68 : vector<1x128xi32>
    %70 = vector.broadcast %67 : i1 to vector<1x128xi1>
    %71 = arith.andi %70, %69 : vector<1x128xi1>
    %cst_32 = arith.constant -1.000000e+03 : f32
    %72 = vector.broadcast %cst_32 : f32 to vector<1x128xf32>
    %73 = arith.select %71, %64, %72 : vector<1x128xi1>, vector<1x128xf32>
    %c0_33 = arith.constant 0 : index
    %c1_34 = arith.constant 1 : index
    %c0_35 = arith.constant 0 : index
    %74 = vector.load %arg11[%c0_33, %c1_34, %c0_35] : memref<1x8x128xf32, #tpu.memory_space<vmem>>, vector<1x1x128xf32>
    %75 = vector.shape_cast %74 : vector<1x1x128xf32> to vector<1x128xf32>
    %76 = vector.shape_cast %73 : vector<1x128xf32> to vector<1x1x128xf32>
    tpu.vector_store %arg11[%c0_33, %c1_34, %c0_35], %76 {strides = array<i32>} : memref<1x8x128xf32, #tpu.memory_space<vmem>>, vector<1x1x128xf32>,
    %77 = vector.extract_strided_slice %9 {offsets = [0, 2], sizes = [32, 1], strides = [1, 1]} : vector<32x8xf32> to vector<32x1xf32>
    %78 = vector.broadcast %77 : vector<32x1xf32> to vector<32x128xf32>
    %79 = arith.addf %78, %14 : vector<32x128xf32>
    %80 = math.tanh %79 : vector<32x128xf32>
    %cst_36 = arith.constant dense<0.000000e+00> : vector<1x128xf32>
    %81 = tpu.matmul %15, %80, %cst_36 {dimension_numbers = #tpu.dot_dimension_numbers<[1], [0], [0], [1], [0, 0, 1, 1], [], []>} : vector<1x32xf32>, vector<32x128xf32>, vector<1x128xf32> -> vector<1x128xf32>
    %c0_37 = arith.constant 0 : index
    %c2 = arith.constant 2 : index
    %c0_38 = arith.constant 0 : index
    %82 = vector.load %arg6[%c0_37, %c2, %c0_38] : memref<1x8x128xf32, #tpu.memory_space<vmem>>, vector<1x1x128xf32>
    %83 = vector.shape_cast %82 : vector<1x1x128xf32> to vector<1x128xf32>
    %84 = arith.addf %81, %83 : vector<1x128xf32>
    %cst_39 = arith.constant 0.000000e+00 : f32
    %85 = vector.broadcast %cst_39 : f32 to vector<1x128xf32>
    %86 = arith.minimumf %84, %85 : vector<1x128xf32>
    %87 = math.absf %84 : vector<1x128xf32>
    %cst_40 = arith.constant 0.000000e+00 : f32
    %88 = vector.broadcast %cst_40 : f32 to vector<1x128xf32>
    %89 = arith.subf %88, %87 : vector<1x128xf32>
    %90 = math.exp %89 : vector<1x128xf32>
    %cst_41 = arith.constant 1.000000e+00 : f32
    %91 = vector.broadcast %cst_41 : f32 to vector<1x128xf32>
    %92 = arith.addf %91, %90 : vector<1x128xf32>
    %93 = math.log %92 : vector<1x128xf32>
    %94 = arith.subf %86, %93 : vector<1x128xf32>
    %c8_i32_42 = arith.constant 8 : i32
    %95 = arith.muli %arg1, %c8_i32_42 : i32
    %c2_i32 = arith.constant 2 : i32
    %96 = arith.addi %95, %c2_i32 : i32
    %97 = arith.cmpi slt, %96, %1 : i32
    %98 = vector.broadcast %3 : i32 to vector<1x128xi32>
    %99 = arith.cmpi slt, %16, %98 : vector<1x128xi32>
    %100 = vector.broadcast %97 : i1 to vector<1x128xi1>
    %101 = arith.andi %100, %99 : vector<1x128xi1>
    %cst_43 = arith.constant -1.000000e+03 : f32
    %102 = vector.broadcast %cst_43 : f32 to vector<1x128xf32>
    %103 = arith.select %101, %94, %102 : vector<1x128xi1>, vector<1x128xf32>
    %c0_44 = arith.constant 0 : index
    %c2_45 = arith.constant 2 : index
    %c0_46 = arith.constant 0 : index
    %104 = vector.load %arg11[%c0_44, %c2_45, %c0_46] : memref<1x8x128xf32, #tpu.memory_space<vmem>>, vector<1x1x128xf32>
    %105 = vector.shape_cast %104 : vector<1x1x128xf32> to vector<1x128xf32>
    %106 = vector.shape_cast %103 : vector<1x128xf32> to vector<1x1x128xf32>
    tpu.vector_store %arg11[%c0_44, %c2_45, %c0_46], %106 {strides = array<i32>} : memref<1x8x128xf32, #tpu.memory_space<vmem>>, vector<1x1x128xf32>,
    %107 = vector.extract_strided_slice %9 {offsets = [0, 3], sizes = [32, 1], strides = [1, 1]} : vector<32x8xf32> to vector<32x1xf32>
    %108 = vector.broadcast %107 : vector<32x1xf32> to vector<32x128xf32>
    %109 = arith.addf %108, %14 : vector<32x128xf32>
    %110 = math.tanh %109 : vector<32x128xf32>
    %cst_47 = arith.constant dense<0.000000e+00> : vector<1x128xf32>
    %111 = tpu.matmul %15, %110, %cst_47 {dimension_numbers = #tpu.dot_dimension_numbers<[1], [0], [0], [1], [0, 0, 1, 1], [], []>} : vector<1x32xf32>, vector<32x128xf32>, vector<1x128xf32> -> vector<1x128xf32>
    %c0_48 = arith.constant 0 : index
    %c3 = arith.constant 3 : index
    %c0_49 = arith.constant 0 : index
    %112 = vector.load %arg6[%c0_48, %c3, %c0_49] : memref<1x8x128xf32, #tpu.memory_space<vmem>>, vector<1x1x128xf32>
    %113 = vector.shape_cast %112 : vector<1x1x128xf32> to vector<1x128xf32>
    %114 = arith.addf %111, %113 : vector<1x128xf32>
    %cst_50 = arith.constant 0.000000e+00 : f32
    %115 = vector.broadcast %cst_50 : f32 to vector<1x128xf32>
    %116 = arith.minimumf %114, %115 : vector<1x128xf32>
    %117 = math.absf %114 : vector<1x128xf32>
    %cst_51 = arith.constant 0.000000e+00 : f32
    %118 = vector.broadcast %cst_51 : f32 to vector<1x128xf32>
    %119 = arith.subf %118, %117 : vector<1x128xf32>
    %120 = math.exp %119 : vector<1x128xf32>
    %cst_52 = arith.constant 1.000000e+00 : f32
    %121 = vector.broadcast %cst_52 : f32 to vector<1x128xf32>
    %122 = arith.addf %121, %120 : vector<1x128xf32>
    %123 = math.log %122 : vector<1x128xf32>
    %124 = arith.subf %116, %123 : vector<1x128xf32>
    %c8_i32_53 = arith.constant 8 : i32
    %125 = arith.muli %arg1, %c8_i32_53 : i32
    %c3_i32 = arith.constant 3 : i32
    %126 = arith.addi %125, %c3_i32 : i32
    %127 = arith.cmpi slt, %126, %1 : i32
    %128 = vector.broadcast %3 : i32 to vector<1x128xi32>
    %129 = arith.cmpi slt, %16, %128 : vector<1x128xi32>
    %130 = vector.broadcast %127 : i1 to vector<1x128xi1>
    %131 = arith.andi %130, %129 : vector<1x128xi1>
    %cst_54 = arith.constant -1.000000e+03 : f32
    %132 = vector.broadcast %cst_54 : f32 to vector<1x128xf32>
    %133 = arith.select %131, %124, %132 : vector<1x128xi1>, vector<1x128xf32>
    %c0_55 = arith.constant 0 : index
    %c3_56 = arith.constant 3 : index
    %c0_57 = arith.constant 0 : index
    %134 = vector.load %arg11[%c0_55, %c3_56, %c0_57] : memref<1x8x128xf32, #tpu.memory_space<vmem>>, vector<1x1x128xf32>
    %135 = vector.shape_cast %134 : vector<1x1x128xf32> to vector<1x128xf32>
    %136 = vector.shape_cast %133 : vector<1x128xf32> to vector<1x1x128xf32>
    tpu.vector_store %arg11[%c0_55, %c3_56, %c0_57], %136 {strides = array<i32>} : memref<1x8x128xf32, #tpu.memory_space<vmem>>, vector<1x1x128xf32>,
    %137 = vector.extract_strided_slice %9 {offsets = [0, 4], sizes = [32, 1], strides = [1, 1]} : vector<32x8xf32> to vector<32x1xf32>
    %138 = vector.broadcast %137 : vector<32x1xf32> to vector<32x128xf32>
    %139 = arith.addf %138, %14 : vector<32x128xf32>
    %140 = math.tanh %139 : vector<32x128xf32>
    %cst_58 = arith.constant dense<0.000000e+00> : vector<1x128xf32>
    %141 = tpu.matmul %15, %140, %cst_58 {dimension_numbers = #tpu.dot_dimension_numbers<[1], [0], [0], [1], [0, 0, 1, 1], [], []>} : vector<1x32xf32>, vector<32x128xf32>, vector<1x128xf32> -> vector<1x128xf32>
    %c0_59 = arith.constant 0 : index
    %c4 = arith.constant 4 : index
    %c0_60 = arith.constant 0 : index
    %142 = vector.load %arg6[%c0_59, %c4, %c0_60] : memref<1x8x128xf32, #tpu.memory_space<vmem>>, vector<1x1x128xf32>
    %143 = vector.shape_cast %142 : vector<1x1x128xf32> to vector<1x128xf32>
    %144 = arith.addf %141, %143 : vector<1x128xf32>
    %cst_61 = arith.constant 0.000000e+00 : f32
    %145 = vector.broadcast %cst_61 : f32 to vector<1x128xf32>
    %146 = arith.minimumf %144, %145 : vector<1x128xf32>
    %147 = math.absf %144 : vector<1x128xf32>
    %cst_62 = arith.constant 0.000000e+00 : f32
    %148 = vector.broadcast %cst_62 : f32 to vector<1x128xf32>
    %149 = arith.subf %148, %147 : vector<1x128xf32>
    %150 = math.exp %149 : vector<1x128xf32>
    %cst_63 = arith.constant 1.000000e+00 : f32
    %151 = vector.broadcast %cst_63 : f32 to vector<1x128xf32>
    %152 = arith.addf %151, %150 : vector<1x128xf32>
    %153 = math.log %152 : vector<1x128xf32>
    %154 = arith.subf %146, %153 : vector<1x128xf32>
    %c8_i32_64 = arith.constant 8 : i32
    %155 = arith.muli %arg1, %c8_i32_64 : i32
    %c4_i32 = arith.constant 4 : i32
    %156 = arith.addi %155, %c4_i32 : i32
    %157 = arith.cmpi slt, %156, %1 : i32
    %158 = vector.broadcast %3 : i32 to vector<1x128xi32>
    %159 = arith.cmpi slt, %16, %158 : vector<1x128xi32>
    %160 = vector.broadcast %157 : i1 to vector<1x128xi1>
    %161 = arith.andi %160, %159 : vector<1x128xi1>
    %cst_65 = arith.constant -1.000000e+03 : f32
    %162 = vector.broadcast %cst_65 : f32 to vector<1x128xf32>
    %163 = arith.select %161, %154, %162 : vector<1x128xi1>, vector<1x128xf32>
    %c0_66 = arith.constant 0 : index
    %c4_67 = arith.constant 4 : index
    %c0_68 = arith.constant 0 : index
    %164 = vector.load %arg11[%c0_66, %c4_67, %c0_68] : memref<1x8x128xf32, #tpu.memory_space<vmem>>, vector<1x1x128xf32>
    %165 = vector.shape_cast %164 : vector<1x1x128xf32> to vector<1x128xf32>
    %166 = vector.shape_cast %163 : vector<1x128xf32> to vector<1x1x128xf32>
    tpu.vector_store %arg11[%c0_66, %c4_67, %c0_68], %166 {strides = array<i32>} : memref<1x8x128xf32, #tpu.memory_space<vmem>>, vector<1x1x128xf32>,
    %167 = vector.extract_strided_slice %9 {offsets = [0, 5], sizes = [32, 1], strides = [1, 1]} : vector<32x8xf32> to vector<32x1xf32>
    %168 = vector.broadcast %167 : vector<32x1xf32> to vector<32x128xf32>
    %169 = arith.addf %168, %14 : vector<32x128xf32>
    %170 = math.tanh %169 : vector<32x128xf32>
    %cst_69 = arith.constant dense<0.000000e+00> : vector<1x128xf32>
    %171 = tpu.matmul %15, %170, %cst_69 {dimension_numbers = #tpu.dot_dimension_numbers<[1], [0], [0], [1], [0, 0, 1, 1], [], []>} : vector<1x32xf32>, vector<32x128xf32>, vector<1x128xf32> -> vector<1x128xf32>
    %c0_70 = arith.constant 0 : index
    %c5 = arith.constant 5 : index
    %c0_71 = arith.constant 0 : index
    %172 = vector.load %arg6[%c0_70, %c5, %c0_71] : memref<1x8x128xf32, #tpu.memory_space<vmem>>, vector<1x1x128xf32>
    %173 = vector.shape_cast %172 : vector<1x1x128xf32> to vector<1x128xf32>
    %174 = arith.addf %171, %173 : vector<1x128xf32>
    %cst_72 = arith.constant 0.000000e+00 : f32
    %175 = vector.broadcast %cst_72 : f32 to vector<1x128xf32>
    %176 = arith.minimumf %174, %175 : vector<1x128xf32>
    %177 = math.absf %174 : vector<1x128xf32>
    %cst_73 = arith.constant 0.000000e+00 : f32
    %178 = vector.broadcast %cst_73 : f32 to vector<1x128xf32>
    %179 = arith.subf %178, %177 : vector<1x128xf32>
    %180 = math.exp %179 : vector<1x128xf32>
    %cst_74 = arith.constant 1.000000e+00 : f32
    %181 = vector.broadcast %cst_74 : f32 to vector<1x128xf32>
    %182 = arith.addf %181, %180 : vector<1x128xf32>
    %183 = math.log %182 : vector<1x128xf32>
    %184 = arith.subf %176, %183 : vector<1x128xf32>
    %c8_i32_75 = arith.constant 8 : i32
    %185 = arith.muli %arg1, %c8_i32_75 : i32
    %c5_i32 = arith.constant 5 : i32
    %186 = arith.addi %185, %c5_i32 : i32
    %187 = arith.cmpi slt, %186, %1 : i32
    %188 = vector.broadcast %3 : i32 to vector<1x128xi32>
    %189 = arith.cmpi slt, %16, %188 : vector<1x128xi32>
    %190 = vector.broadcast %187 : i1 to vector<1x128xi1>
    %191 = arith.andi %190, %189 : vector<1x128xi1>
    %cst_76 = arith.constant -1.000000e+03 : f32
    %192 = vector.broadcast %cst_76 : f32 to vector<1x128xf32>
    %193 = arith.select %191, %184, %192 : vector<1x128xi1>, vector<1x128xf32>
    %c0_77 = arith.constant 0 : index
    %c5_78 = arith.constant 5 : index
    %c0_79 = arith.constant 0 : index
    %194 = vector.load %arg11[%c0_77, %c5_78, %c0_79] : memref<1x8x128xf32, #tpu.memory_space<vmem>>, vector<1x1x128xf32>
    %195 = vector.shape_cast %194 : vector<1x1x128xf32> to vector<1x128xf32>
    %196 = vector.shape_cast %193 : vector<1x128xf32> to vector<1x1x128xf32>
    tpu.vector_store %arg11[%c0_77, %c5_78, %c0_79], %196 {strides = array<i32>} : memref<1x8x128xf32, #tpu.memory_space<vmem>>, vector<1x1x128xf32>,
    %197 = vector.extract_strided_slice %9 {offsets = [0, 6], sizes = [32, 1], strides = [1, 1]} : vector<32x8xf32> to vector<32x1xf32>
    %198 = vector.broadcast %197 : vector<32x1xf32> to vector<32x128xf32>
    %199 = arith.addf %198, %14 : vector<32x128xf32>
    %200 = math.tanh %199 : vector<32x128xf32>
    %cst_80 = arith.constant dense<0.000000e+00> : vector<1x128xf32>
    %201 = tpu.matmul %15, %200, %cst_80 {dimension_numbers = #tpu.dot_dimension_numbers<[1], [0], [0], [1], [0, 0, 1, 1], [], []>} : vector<1x32xf32>, vector<32x128xf32>, vector<1x128xf32> -> vector<1x128xf32>
    %c0_81 = arith.constant 0 : index
    %c6 = arith.constant 6 : index
    %c0_82 = arith.constant 0 : index
    %202 = vector.load %arg6[%c0_81, %c6, %c0_82] : memref<1x8x128xf32, #tpu.memory_space<vmem>>, vector<1x1x128xf32>
    %203 = vector.shape_cast %202 : vector<1x1x128xf32> to vector<1x128xf32>
    %204 = arith.addf %201, %203 : vector<1x128xf32>
    %cst_83 = arith.constant 0.000000e+00 : f32
    %205 = vector.broadcast %cst_83 : f32 to vector<1x128xf32>
    %206 = arith.minimumf %204, %205 : vector<1x128xf32>
    %207 = math.absf %204 : vector<1x128xf32>
    %cst_84 = arith.constant 0.000000e+00 : f32
    %208 = vector.broadcast %cst_84 : f32 to vector<1x128xf32>
    %209 = arith.subf %208, %207 : vector<1x128xf32>
    %210 = math.exp %209 : vector<1x128xf32>
    %cst_85 = arith.constant 1.000000e+00 : f32
    %211 = vector.broadcast %cst_85 : f32 to vector<1x128xf32>
    %212 = arith.addf %211, %210 : vector<1x128xf32>
    %213 = math.log %212 : vector<1x128xf32>
    %214 = arith.subf %206, %213 : vector<1x128xf32>
    %c8_i32_86 = arith.constant 8 : i32
    %215 = arith.muli %arg1, %c8_i32_86 : i32
    %c6_i32 = arith.constant 6 : i32
    %216 = arith.addi %215, %c6_i32 : i32
    %217 = arith.cmpi slt, %216, %1 : i32
    %218 = vector.broadcast %3 : i32 to vector<1x128xi32>
    %219 = arith.cmpi slt, %16, %218 : vector<1x128xi32>
    %220 = vector.broadcast %217 : i1 to vector<1x128xi1>
    %221 = arith.andi %220, %219 : vector<1x128xi1>
    %cst_87 = arith.constant -1.000000e+03 : f32
    %222 = vector.broadcast %cst_87 : f32 to vector<1x128xf32>
    %223 = arith.select %221, %214, %222 : vector<1x128xi1>, vector<1x128xf32>
    %c0_88 = arith.constant 0 : index
    %c6_89 = arith.constant 6 : index
    %c0_90 = arith.constant 0 : index
    %224 = vector.load %arg11[%c0_88, %c6_89, %c0_90] : memref<1x8x128xf32, #tpu.memory_space<vmem>>, vector<1x1x128xf32>
    %225 = vector.shape_cast %224 : vector<1x1x128xf32> to vector<1x128xf32>
    %226 = vector.shape_cast %223 : vector<1x128xf32> to vector<1x1x128xf32>
    tpu.vector_store %arg11[%c0_88, %c6_89, %c0_90], %226 {strides = array<i32>} : memref<1x8x128xf32, #tpu.memory_space<vmem>>, vector<1x1x128xf32>,
    %227 = vector.extract_strided_slice %9 {offsets = [0, 7], sizes = [32, 1], strides = [1, 1]} : vector<32x8xf32> to vector<32x1xf32>
    %228 = vector.broadcast %227 : vector<32x1xf32> to vector<32x128xf32>
    %229 = arith.addf %228, %14 : vector<32x128xf32>
    %230 = math.tanh %229 : vector<32x128xf32>
    %cst_91 = arith.constant dense<0.000000e+00> : vector<1x128xf32>
    %231 = tpu.matmul %15, %230, %cst_91 {dimension_numbers = #tpu.dot_dimension_numbers<[1], [0], [0], [1], [0, 0, 1, 1], [], []>} : vector<1x32xf32>, vector<32x128xf32>, vector<1x128xf32> -> vector<1x128xf32>
    %c0_92 = arith.constant 0 : index
    %c7 = arith.constant 7 : index
    %c0_93 = arith.constant 0 : index
    %232 = vector.load %arg6[%c0_92, %c7, %c0_93] : memref<1x8x128xf32, #tpu.memory_space<vmem>>, vector<1x1x128xf32>
    %233 = vector.shape_cast %232 : vector<1x1x128xf32> to vector<1x128xf32>
    %234 = arith.addf %231, %233 : vector<1x128xf32>
    %cst_94 = arith.constant 0.000000e+00 : f32
    %235 = vector.broadcast %cst_94 : f32 to vector<1x128xf32>
    %236 = arith.minimumf %234, %235 : vector<1x128xf32>
    %237 = math.absf %234 : vector<1x128xf32>
    %cst_95 = arith.constant 0.000000e+00 : f32
    %238 = vector.broadcast %cst_95 : f32 to vector<1x128xf32>
    %239 = arith.subf %238, %237 : vector<1x128xf32>
    %240 = math.exp %239 : vector<1x128xf32>
    %cst_96 = arith.constant 1.000000e+00 : f32
    %241 = vector.broadcast %cst_96 : f32 to vector<1x128xf32>
    %242 = arith.addf %241, %240 : vector<1x128xf32>
    %243 = math.log %242 : vector<1x128xf32>
    %244 = arith.subf %236, %243 : vector<1x128xf32>
    %c8_i32_97 = arith.constant 8 : i32
    %245 = arith.muli %arg1, %c8_i32_97 : i32
    %c7_i32 = arith.constant 7 : i32
    %246 = arith.addi %245, %c7_i32 : i32
    %247 = arith.cmpi slt, %246, %1 : i32
    %248 = vector.broadcast %3 : i32 to vector<1x128xi32>
    %249 = arith.cmpi slt, %16, %248 : vector<1x128xi32>
    %250 = vector.broadcast %247 : i1 to vector<1x128xi1>
    %251 = arith.andi %250, %249 : vector<1x128xi1>
    %cst_98 = arith.constant -1.000000e+03 : f32
    %252 = vector.broadcast %cst_98 : f32 to vector<1x128xf32>
    %253 = arith.select %251, %244, %252 : vector<1x128xi1>, vector<1x128xf32>
    %c0_99 = arith.constant 0 : index
    %c7_100 = arith.constant 7 : index
    %c0_101 = arith.constant 0 : index
    %254 = vector.load %arg11[%c0_99, %c7_100, %c0_101] : memref<1x8x128xf32, #tpu.memory_space<vmem>>, vector<1x1x128xf32>
    %255 = vector.shape_cast %254 : vector<1x1x128xf32> to vector<1x128xf32>
    %256 = vector.shape_cast %253 : vector<1x128xf32> to vector<1x1x128xf32>
    tpu.vector_store %arg11[%c0_99, %c7_100, %c0_101], %256 {strides = array<i32>} : memref<1x8x128xf32, #tpu.memory_space<vmem>>, vector<1x1x128xf32>,
    return
  }
  func.func @transform_0(%arg0: i32, %arg1: i32, %arg2: memref<2xi32, #tpu.memory_space<smem>>, %arg3: memref<2xi32, #tpu.memory_space<smem>>) -> (i32, i32, i32) {
    %c0_i32 = arith.constant 0 : i32
    %c0_i32_0 = arith.constant 0 : i32
    return %arg0, %arg1, %c0_i32 : i32, i32, i32
  }
  func.func @transform_1(%arg0: i32, %arg1: i32, %arg2: memref<2xi32, #tpu.memory_space<smem>>, %arg3: memref<2xi32, #tpu.memory_space<smem>>) -> (i32, i32, i32) {
    %c0_i32 = arith.constant 0 : i32
    %c0_i32_0 = arith.constant 0 : i32
    %c0_i32_1 = arith.constant 0 : i32
    return %arg0, %c0_i32, %c0_i32_0 : i32, i32, i32
  }
  func.func @transform_2(%arg0: i32, %arg1: i32, %arg2: memref<2xi32, #tpu.memory_space<smem>>, %arg3: memref<2xi32, #tpu.memory_space<smem>>) -> (i32, i32, i32) {
    %c0_i32 = arith.constant 0 : i32
    %c0_i32_0 = arith.constant 0 : i32
    return %arg0, %arg1, %c0_i32 : i32, i32, i32
  }
  func.func @transform_3(%arg0: i32, %arg1: i32, %arg2: memref<2xi32, #tpu.memory_space<smem>>, %arg3: memref<2xi32, #tpu.memory_space<smem>>) -> (i32, i32) {
    %c0_i32 = arith.constant 0 : i32
    %c0_i32_0 = arith.constant 0 : i32
    %c0_i32_1 = arith.constant 0 : i32
    return %c0_i32, %c0_i32_0 : i32, i32
  }
  func.func @transform_4(%arg0: i32, %arg1: i32, %arg2: memref<2xi32, #tpu.memory_space<smem>>, %arg3: memref<2xi32, #tpu.memory_space<smem>>) -> (i32, i32) {
    %c0_i32 = arith.constant 0 : i32
    %c0_i32_0 = arith.constant 0 : i32
    %c0_i32_1 = arith.constant 0 : i32
    return %c0_i32, %c0_i32_0 : i32, i32
  }
  func.func @transform_5(%arg0: i32, %arg1: i32, %arg2: memref<2xi32, #tpu.memory_space<smem>>, %arg3: memref<2xi32, #tpu.memory_space<smem>>) -> (i32, i32) {
    %c0_i32 = arith.constant 0 : i32
    %c0_i32_0 = arith.constant 0 : i32
    %c0_i32_1 = arith.constant 0 : i32
    return %c0_i32, %c0_i32_0 : i32, i32
  }
  func.func @transform_6(%arg0: i32, %arg1: i32, %arg2: memref<2xi32, #tpu.memory_space<smem>>, %arg3: memref<2xi32, #tpu.memory_space<smem>>) -> (i32, i32) {
    %c0_i32 = arith.constant 0 : i32
    %c0_i32_0 = arith.constant 0 : i32
    %c0_i32_1 = arith.constant 0 : i32
    return %c0_i32, %c0_i32_0 : i32, i32
  }
  func.func @transform_7(%arg0: i32, %arg1: i32, %arg2: memref<2xi32, #tpu.memory_space<smem>>, %arg3: memref<2xi32, #tpu.memory_space<smem>>) -> (i32, i32, i32) {
    %c0_i32 = arith.constant 0 : i32
    %c0_i32_0 = arith.constant 0 : i32
    return %arg0, %arg1, %c0_i32 : i32, i32, i32
  }
}

</mosaic_0001>

<bundles_post_ra>
// kernel: tpu_custom_call.1
= control target key start
LH: loop header
LB: loop body
LE: loop exit
PB: predicated region body
PF: predicated region fallthrough
CT: control target
= control target key end

     0   :  { %s2850_s0 = inlined_call_operand.vmem [shape: s32[2], index: 0, kind: input, shape index: {}]   ;;  %s2851_s2 = inlined_call_operand.vmem [shape: f32[2,8,16], index: 2, kind: input, shape index: {}]   ;;  %s2852_s3 = inlined_call_operand.vmem [shape: f32[2,128,24], index: 3, kind: input, shape index: {}]   ;;  %s2853_s4 = inlined_call_operand.vmem [shape: f32[2,8,128], index: 4, kind: input, shape index: {}]   ;;  %s2854_s5 = inlined_call_operand.vmem [shape: f32[32,16], index: 5, kind: input, shape index: {}]   ;;  %s2855_s6 = inlined_call_operand.vmem [shape: f32[32,24], index: 6, kind: input, shape index: {}]   ;;  %s2856_s7 = inlined_call_operand.vmem [shape: f32[32,1], index: 7, kind: input, shape index: {}]   ;;  %s2857_s8 = inlined_call_operand.vmem [shape: f32[1,32], index: 8, kind: input, shape index: {}]   ;;  %s2858_s9 = inlined_call_operand.hbm [shape: f32[2,8,128], index: 9, kind: output, shape index: {}]   ;;  %s2859_s1 = inlined_call_operand.vmem [shape: s32[2], index: 1, kind: input, shape index: {}]  }
   0x1   :  { %s14_s11 = sshll.u32 %s2850_s0, 4  ;;  %s18_s14 = sshll.u32 %s2859_s1, 4  ;;  %s15_s11 = int_to_ptr.vmem [resolvable:$true] %s14_s11  ;;  %s19_s14 = int_to_ptr.vmem [resolvable:$true] %s18_s14 }
   0x2   :  { %s2221_s15 = scalar_lea.vmem %s15_s11, 16  ;;  %p2226_p1 = scmp.lt.s32.totalorder %s15_s11, %s15_s11 }
   0x3   :  { %p2222_p0 = scmp.ne.s32.totalorder %s15_s11, %s2221_s15  ;;  %p2227_p2 = scmp.lt.s32.totalorder %s2221_s15, %s2221_s15 }
   0x5   :  { %p2228_p3 = por %p2227_p2, %p2226_p1 }
   0x7   :  { %p2229_p4 = pnand %p2228_p3, %p2222_p0 }
   0x9   :  { %2232 = shalt.err (!%p2229_p4)  }
   0xa   :  { %s2327_s16 = smov [#allocation3]   ;;  %s2233_s17 = scalar_lea.vmem %s19_s14, 16 }
   0xb   :  { %17 = dma.vmem_to_smem %s15_s11, 16, %s2327_s16, [#allocation2] }
   0xc   :  { %p2234_p5 = scmp.ne.s32.totalorder %s19_s14, %s2233_s17  ;;  %p2238_p6 = scmp.lt.s32.totalorder %s19_s14, %s19_s14 }
   0xd   :  { %p2239_p7 = scmp.lt.s32.totalorder %s2233_s17, %s2233_s17 }
   0xf   :  { %p2240_p8 = por %p2239_p7, %p2238_p6 }
  0x11   :  { %p2241_p9 = pnand %p2240_p8, %p2234_p5 }
  0x13   :  { %2244 = shalt.err (!%p2241_p9)  }
  0x14   :  { %s2328_s0 = smov [#allocation4]  }
  0x15   :  { %21 = dma.vmem_to_smem %s19_s14, 16, %s2328_s0, [#allocation2] }
  0x16   :  { %2297 = dma.done.wait [#allocation2], 32 }
  0x17   :  { %2298 = vsyncadd [#allocation2], 4294967264 }
  0x18   :  { %23 = sfence }
  0x19   :  { %24 = vsyncpa [#allocation6], 0 }
  0x1a   :  { %26 = vsyncpa [#allocation6 + $0x1], 0  ;;  %s2397_s1 = smov 0   ;;  %s2399_s18 = smov 0  }
  0x1b   :  { %s2401_s19 = smov 0   ;;  %s2403_s20 = smov 0  }
  0x1c   :  { %s2405_s21 = smov 0   ;;  %s2407_s22 = smov 0  }
  0x1d LB: > { %s1679_s23 = sadd.s32 4294967295, %s2325_s22   ;;  %s1680_s24 = sadd.s32 4294967294, %s2325_s22   ;;  %s2325_s22 = sphi %s2407_s22, %s32_s22   ;;  %s2321_s21 = sphi %s2405_s21, %s2872_s21   ;;  %s2317_s20 = sphi %s2403_s20, %s2871_s20   ;;  %s2313_s19 = sphi %s2401_s19, %s2870_s19   ;;  %s2309_s18 = sphi %s2399_s18, %s2869_s18   ;;  %s2305_s1 = sphi %s2397_s1, %s2868_s1  }
  0x1e   : > { %s44_s25 = sadd.s32 1, %s2321_s21  ;;  %s219_s26 = sadd.s32 1, %s2313_s19 }
  0x1f   : > { %p46_p10 = scmp.ge.s32.totalorder %s44_s25, 2  ;;  %p229_p11 = scmp.ne.s32.totalorder %s2313_s19, %s2309_s18 }
  0x20   : > { %p230_p12 = scmp.eq.s32.totalorder %s1679_s23, 1  ;;  %p235_p13 = scmp.ne.s32.totalorder %s2309_s18, %s2305_s1 }
  0x21   : > { %s2874_s25 = smov (%p46_p10, %s44_s25), 0  ;;  %p236_p1 = scmp.eq.s32.totalorder %s1680_s24, 1 }
  0x22   : > { %p2437_p0 = por %p230_p12, %p229_p11  ;;  %s214_s28 = ssub.s32 %s2321_s21, %s2874_s25 }
  0x23   : > { %p1683_p2 = scmp.ge.s32.totalorder %s2325_s22, 1  ;;  %p217_p3 = scmp.eq.s32.totalorder %s214_s28, 0 }
  0x24   : > { %p2444_p4 = por %p236_p1, %p235_p13  ;;  %p294_p5 = scmp.lt.s32.totalorder %s2325_s22, 3 }
  0x25   : > { %s2450_s30 = scalar_select %p217_p3, %s2313_s19, %s219_s26  }
  0x26   : > { %p295_p6 = pnand %p1683_p2, %p294_p5 }
  0x27   : > { %p340_p7 = scmp.lt.s32.totalorder (!%p295_p6), %s2317_s20, 1  ;;  %vm382_vm0 = vcmask (!%p295_p6), 130048   ;;  %v378_v0 = vld [vmem:[%s2854_s5] sm:$0xff] (!%p295_p6)  ;;  %vm511_vm1 = vcmask (!%p295_p6), 195584   ;;  %v2329_v2 = vmov (!%p295_p6), 0   ;;  %v490_v4 = vld [vmem:[%s2856_s7 + $0x18] sm:$0xff] (!%p295_p6) }
  0x28   : > { %298 = sbr.rel (%p295_p6) target bundleno = 770 (0x302), region = 48  ;;  %1802 = vmatprep.mubr.msk.f32.mxu0 (!%p295_p6), %vm382_vm0, %v378_v0  ;;  %v483_v1 = vld [vmem:[%s2855_s6] sm:$0xff] (!%p295_p6)  ;;  %2098 = vset.pattern.permute.xlu0 (!%p295_p6), %v2329_v2  ;;  %vm2486_vm2 = vmpackc.low (!%p295_p6), %vm511_vm1, %vm511_vm1  ;;  %v488_v6 = vld [vmem:[%s2856_s7 + $0x8] sm:$0xff] (!%p295_p6)  ;;  %v2330_v39 = vmov (!%p295_p6), 1   ;;  %v2331_v44 = vmov (!%p295_p6), 2   ;;  %v2332_v45 = vmov (!%p295_p6), 3  }
  0x29   : > { %1840 = vmatprep.mubr.msk.f32.mxu1 (!%p295_p6), %vm511_vm1, %v483_v1  ;;  %v487_v3 = vld [vmem:[%s2856_s7] sm:$0xff] (!%p295_p6)  ;;  %2099 = vset.pattern.permute.xlu1 (!%p295_p6), %v2329_v2  ;;  %v379_v13 = vld [vmem:[%s2854_s5 + $0x8] sm:$0xff] (!%p295_p6)  ;;  %v380_v15 = vld [vmem:[%s2854_s5 + $0x10] sm:$0xff] (!%p295_p6)  ;;  %v2333_v46 = vmov (!%p295_p6), 0.0|0.0   ;;  %v2334_v47 = vmov (!%p295_p6), 4   ;;  %v2335_v48 = vmov (!%p295_p6), 5  }
  0x2a   : > { %493 = vperm.xlu0 (!%p295_p6), %2098, %v487_v3   ;;  %508 = vperm.xlu1 (!%p295_p6), %2099, %v490_v4   ;;  %v489_v16 = vld [vmem:[%s2856_s7 + $0x10] sm:$0xff] (!%p295_p6)  ;;  %v381_v17 = vld [vmem:[%s2854_s5 + $0x18] sm:$0xff] (!%p295_p6)  ;;  %v484_v36 = vld [vmem:[%s2855_s6 + $0x8] sm:$0xff] (!%p295_p6)  ;;  %vm2336_vm3 = vmmov (!%p295_p6), 0   ;;  %v2337_v49 = vmov (!%p295_p6), 0.0   ;;  %v2338_v50 = vmov (!%p295_p6), 6  }
  0x2b   : > { %v485_v37 = vld [vmem:[%s2855_s6 + $0x10] sm:$0xff] (!%p295_p6)  ;;  %v486_v38 = vld [vmem:[%s2855_s6 + $0x18] sm:$0xff] (!%p295_p6)  ;;  %v2339_v51 = vmov (!%p295_p6), 7   ;;  %vm689_vm4 = vcmask (!%p295_p6), 261120   ;;  %s2715_s15 = sld [smem:[#allocation3 + %s2317_s20]] (!%p295_p6)  ;;  %s337_s16 = sand.u32 (!%p295_p6), 1, %s2309_s18  }
  0x2c   : > { %s1684_s17 = sshll.u32 (!%p295_p6), %s337_s16, 3 }
  0x2d   : > { %s2746_s0 = scalar_lea.vmem (!%p295_p6), [#allocation5], %s1684_s17 }
  0x2e   : > { %498 = vperm.xlu0 (!%p295_p6), %2098, %v488_v6  }
  0x2f   : > { %s2461_s14 = scalar_select %p340_p7, %s2317_s20, 1 }
  0x31   : > { %s1685_s23 = sshll.u32 %s2461_s14, 3  ;;  %s1734_s24 = sshll.u32 %s2461_s14, 7 }
  0x32   : > { %s346_s10 = scalar_lea.vmem %s2851_s2, %s1685_s23  ;;  %s2482_s13 = scalar_lea.vmem %s2852_s3, %s1734_s24  ;;  %503 = vperm.xlu0 %2098, %v489_v16  }
  0x33   : > { %v361_v7 = vld [vmem:[%s346_s10] sm:$0xff]  ;;  %v363_v9 = vld [vmem:[%s2482_s13 + $0x8] sm:$0xff]  ;;  %v364_v11 = vld [vmem:[%s2482_s13 + $0x10] sm:$0xff]  ;;  %s2711_s12 = scalar_lea.vmem %s2853_s4, %s1685_s23  ;;  %s360_s14 = sld [smem:[#allocation4 + %s2317_s20]] }
  0x34   : > { %v362_v8 = vld [vmem:[%s2482_s13] sm:$0xff]  ;;  %1800 = vmatprep.subr.msk.mxu0 %vm382_vm0, %v361_v7  ;;  %v365_v12 = vld [vmem:[%s2482_s13 + $0x18] sm:$0xff]  ;;  %v367_v19 = vld [vmem:[%s2482_s13 + $0x28] sm:$0xff]  ;;  %p1715_p8 = scmp.gt.s32.totalorder %s2715_s15, 0  ;;  %p1717_p9 = scmp.gt.s32.totalorder %s2715_s15, 1 }
  0x35   : > { %v1934_v10 = vpack.c.bf16 %v363_v9, %v362_v8  ;;  %1801 = vmatpush3.xpose.msk.msra.mxu0 %vm382_vm0, %v361_v7  ;;  %v1940_v14 = vpack.c.bf16 %v365_v12, %v364_v11  ;;  %v366_v18 = vld [vmem:[%s2482_s13 + $0x20] sm:$0xff]  ;;  %v368_v21 = vld [vmem:[%s2482_s13 + $0x30] sm:$0xff]  ;;  %v369_v22 = vld [vmem:[%s2482_s13 + $0x38] sm:$0xff]  ;;  %p1719_p10 = scmp.gt.s32.totalorder %s2715_s15, 2  ;;  %p1721_p11 = scmp.gt.s32.totalorder %s2715_s15, 3 }
  0x36   : > { %v1946_v20 = vpack.c.bf16 %v367_v19, %v366_v18  ;;  %v1952_v23 = vpack.c.bf16 %v369_v22, %v368_v21  ;;  %v370_v24 = vld [vmem:[%s2482_s13 + $0x40] sm:$0xff]  ;;  %v371_v25 = vld [vmem:[%s2482_s13 + $0x48] sm:$0xff]  ;;  %v372_v27 = vld [vmem:[%s2482_s13 + $0x50] sm:$0xff]  ;;  %2102 = vset.pattern.permute.xlu0 %v2330_v39  ;;  %1982 = vmatprep.subr.bf16.mxu0 %v2333_v46  ;;  %s776_s23 = scalar_select %p1715_p8, 1, 0 }
  0x37   : > { %1936 = vmatprep.subr.msk.bf16.mxu1 %vm2486_vm2, %v1934_v10  ;;  %v1958_v26 = vpack.c.bf16 %v371_v25, %v370_v24  ;;  %v373_v28 = vld [vmem:[%s2482_s13 + $0x58] sm:$0xff]  ;;  %v374_v30 = vld [vmem:[%s2482_s13 + $0x60] sm:$0xff]  ;;  %v375_v31 = vld [vmem:[%s2482_s13 + $0x68] sm:$0xff]  ;;  %s1000_s24 = scalar_select %p1719_p10, 1, 0 }
  0x38   : > { %1939 = vmatpush3.bf16.xpose.msk.msra.mxu1 %vm2486_vm2, %v1934_v10  ;;  %1803 = vmatmul.mubr.msk.f32.vlgmr.msra.gmra.mrb[0].mxu0 %vm382_vm0, %v379_v13  ;;  %v1964_v29 = vpack.c.bf16 %v373_v28, %v372_v27  ;;  %v1970_v32 = vpack.c.bf16 %v375_v31, %v374_v30  ;;  %v376_v33 = vld [vmem:[%s2482_s13 + $0x70] sm:$0xff]  ;;  %v377_v34 = vld [vmem:[%s2482_s13 + $0x78] sm:$0xff]  ;;  %s888_s13 = scalar_select %p1717_p9, 1, 0 }
  0x39   : > { %1942 = vmatprep.subr.msk.bf16.mxu1 %vm2486_vm2, %v1940_v14  ;;  %1805 = vmatprep.mubr.msk.f32.mxu0 %vm382_vm0, %v380_v15  ;;  %v1976_v35 = vpack.c.bf16 %v377_v34, %v376_v33  ;;  %s1112_s26 = scalar_select %p1721_p11, 1, 0 }
  0x3a   : > { %p1723_p12 = scmp.gt.s32.totalorder %s2715_s15, 4  ;;  %p1725_p13 = scmp.gt.s32.totalorder %s2715_s15, 5 }
  0x3b   : > { %p1727_p1 = scmp.gt.s32.totalorder %s2715_s15, 6  ;;  %p1729_p2 = scmp.gt.s32.totalorder %s2715_s15, 7 }
  0x3c   : > { %1806 = vmatmul.mubr.msk.f32.gmra.mrb[2].mxu0 %vm382_vm0, %v381_v17  ;;  %s1224_s28 = scalar_select %p1723_p12, 1, 0 }
  0x3d   : > { %1854 = vmatprep.mubr.msk.f32.mxu0 %vm2336_vm3, %v2337_v49  ;;  %s1336_s10 = scalar_select %p1725_p13, 1, 0 }
  0x3e   : > { %s1448_s11 = scalar_select %p1727_p1, 1, 0 }
  0x3f   : > { %s1731_s15 = sshll.u32 %s2317_s20, 7 }
  0x40   : > { %1945 = vmatpush3.bf16.xpose.msk.msra.mxu1 %vm2486_vm2, %v1940_v14 }
  0x41   : > { %1948 = vmatprep.subr.msk.bf16.mxu1 %vm2486_vm2, %v1946_v20 }
  0x48   : > { %1951 = vmatpush3.bf16.xpose.msk.msra.mxu1 %vm2486_vm2, %v1946_v20 }
  0x49   : > { %1954 = vmatprep.subr.msk.bf16.mxu1 %vm2486_vm2, %v1952_v23 }
  0x50   : > { %1957 = vmatpush3.bf16.xpose.msk.msra.mxu1 %vm2486_vm2, %v1952_v23 }
  0x51   : > { %1960 = vmatprep.subr.msk.bf16.mxu1 %vm2486_vm2, %v1958_v26 }
  0x58   : > { %1963 = vmatpush3.bf16.xpose.msk.msra.mxu1 %vm2486_vm2, %v1958_v26 }
  0x59   : > { %1966 = vmatprep.subr.msk.bf16.mxu1 %vm2486_vm2, %v1964_v29 }
  0x60   : > { %1969 = vmatpush3.bf16.xpose.msk.msra.mxu1 %vm2486_vm2, %v1964_v29  ;;  %v2638_v29 = vld [vmem:[%s2857_s8] sm:$0x1] }
  0x61   : > { %1972 = vmatprep.subr.msk.bf16.mxu1 %vm2486_vm2, %v1970_v32 }
  0x68   : > { %1975 = vmatpush3.bf16.xpose.msk.msra.mxu1 %vm2486_vm2, %v1970_v32 }
  0x69   : > { %1978 = vmatprep.subr.msk.bf16.mxu1 %vm2486_vm2, %v1976_v35 }
  0x70   : > { %1981 = vmatpush3.bf16.xpose.msk.msra.mxu1 %vm2486_vm2, %v1976_v35 }
  0x77   : > { %1841 = vmatmul.mubr.msk.f32.vlgmr.msra.gmra.mrb[0].mxu1 %vm511_vm1, %v484_v36 }
  0x78   : > { %1843 = vmatprep.mubr.msk.f32.mxu1 %vm511_vm1, %v485_v37 }
  0x7b   : > { %1844 = vmatmul.mubr.msk.f32.gmra.mrb[2].mxu1 %vm511_vm1, %v486_v38 }
  0xa9   : > { %v494_v56 = vpop.permute.xlu0 %493  ;;  %v509_v57 = vpop.permute.xlu1 %508 }
  0xad   : > { %v499_v58 = vpop.permute.xlu0 %498 }
  0xb1   : > { %v504_v60 = vpop.permute.xlu0 %503 }
 0x10b   : > { %v2570_v40 = vpop.f32.mrb[0].mxu0 }
 0x10c   : > { %667 = vperm.xlu1 %2099, %v2570_v40   ;;  %v2573_v41 = vpop.f32.mrb[1].mxu0 }
 0x10d   : > { %783 = vperm.xlu0 %2102, %v2573_v41  }
 0x10f   : > { %v2576_v42 = vpop.f32.mrb[2].mxu0 }
 0x110   : > { %2100 = vset.pattern.permute.xlu1 %v2330_v39  ;;  %v2578_v43 = vpop.f32.mrb[3].mxu0 }
 0x111   : > { %787 = vperm.xlu1 %2100, %v2570_v40   ;;  %795 = vperm.xlu0 %2102, %v2576_v42  }
 0x115   : > { %2101 = vset.pattern.permute.xlu1 %v2329_v2  ;;  %2105 = vset.pattern.permute.xlu0 %v2329_v2 }
 0x116   : > { %662 = vperm.xlu1 %2101, %v2573_v41   ;;  %672 = vperm.xlu0 %2105, %v2578_v43  }
 0x11a   : > { %2103 = vset.pattern.permute.xlu1 %v2331_v44  ;;  %2106 = vset.pattern.permute.xlu0 %v2331_v44 }
 0x11b   : > { %895 = vperm.xlu1 %2103, %v2573_v41   ;;  %899 = vperm.xlu0 %2106, %v2570_v40  }
 0x11f   : > { %2104 = vset.pattern.permute.xlu1 %v2329_v2  ;;  %2108 = vset.pattern.permute.xlu0 %v2332_v45 }
 0x120   : > { %677 = vperm.xlu1 %2104, %v2576_v42   ;;  %1007 = vperm.xlu0 %2108, %v2573_v41  }
 0x124   : > { %2107 = vset.pattern.permute.xlu1 %v2331_v44  ;;  %1019 = vperm.xlu0 %2108, %v2576_v42  }
 0x125   : > { %907 = vperm.xlu1 %2107, %v2576_v42  }
 0x128   : > { %2112 = vset.pattern.permute.xlu0 %v2334_v47 }
 0x129   : > { %2109 = vset.pattern.permute.xlu1 %v2332_v45  ;;  %1123 = vperm.xlu0 %2112, %v2570_v40  }
 0x12a   : > { %1011 = vperm.xlu1 %2109, %v2570_v40  }
 0x12d   : > { %2115 = vset.pattern.permute.xlu0 %v2335_v48 }
 0x12e   : > { %2110 = vset.pattern.permute.xlu1 %v2330_v39  ;;  %1231 = vperm.xlu0 %2115, %v2573_v41  }
 0x12f   : > { %791 = vperm.xlu1 %2110, %v2578_v43  }
 0x132   : > { %1243 = vperm.xlu0 %2115, %v2576_v42  }
 0x133   : > { %2111 = vset.pattern.permute.xlu1 %v2334_v47 }
 0x134   : > { %1119 = vperm.xlu1 %2111, %v2573_v41  }
 0x136   : > { %2120 = vset.pattern.permute.xlu0 %v2338_v50 }
 0x137   : > { %1347 = vperm.xlu0 %2120, %v2570_v40  }
 0x138   : > { %2113 = vset.pattern.permute.xlu1 %v2331_v44 }
 0x139   : > { %903 = vperm.xlu1 %2113, %v2578_v43  }
 0x13b   : > { %2123 = vset.pattern.permute.xlu0 %v2339_v51 }
 0x13c   : > { %1455 = vperm.xlu0 %2123, %v2573_v41  }
 0x13d   : > { %2114 = vset.pattern.permute.xlu1 %v2334_v47 }
 0x13e   : > { %1131 = vperm.xlu1 %2114, %v2576_v42  }
 0x140   : > { %1467 = vperm.xlu0 %2123, %v2576_v42  }
 0x142   : > { %2116 = vset.pattern.permute.xlu1 %v2332_v45 }
 0x143   : > { %1015 = vperm.xlu1 %2116, %v2578_v43  }
 0x147   : > { %2117 = vset.pattern.permute.xlu1 %v2335_v48 }
 0x148   : > { %1235 = vperm.xlu1 %2117, %v2570_v40  }
 0x14a   : > { %v1842_v52 = vpop.f32.mrb[0].mxu1 }
 0x14b   : > { %v638_v53 = vpop.f32.mrb[1].mxu1  ;;  %v2616_v61 = vadd.f32 %v1842_v52, %v499_v58 }
 0x14c   : > { %2118 = vset.pattern.permute.xlu1 %v2334_v47  ;;  %v2619_v1 = vadd.f32 %v638_v53, %v494_v56 }
 0x14d   : > { %1127 = vperm.xlu1 %2118, %v2578_v43  }
 0x14e   : > { %v1845_v54 = vpop.f32.mrb[2].mxu1 }
 0x14f   : > { %v648_v55 = vpop.f32.mrb[3].mxu1  ;;  %v2625_v9 = vadd.f32 %v1845_v54, %v509_v57 }
 0x150   : > { %v2622_v5 = vadd.f32 %v648_v55, %v504_v60 }
 0x151   : > { %2119 = vset.pattern.permute.xlu1 %v2338_v50 }
 0x152   : > { %1343 = vperm.xlu1 %2119, %v2573_v41  }
 0x156   : > { %2121 = vset.pattern.permute.xlu1 %v2335_v48 }
 0x157   : > { %1239 = vperm.xlu1 %2121, %v2578_v43  }
 0x15b   : > { %2122 = vset.pattern.permute.xlu1 %v2338_v50 }
 0x15c   : > { %1355 = vperm.xlu1 %2122, %v2576_v42  }
 0x160   : > { %1351 = vperm.xlu1 %2122, %v2578_v43  }
 0x164   : > { %2124 = vset.pattern.permute.xlu1 %v2339_v51 }
 0x165   : > { %1459 = vperm.xlu1 %2124, %v2570_v40  }
 0x169   : > { %1463 = vperm.xlu1 %2124, %v2578_v43  }
 0x18b   : > { %v668_v59 = vpop.permute.xlu1 %667 }
 0x18c   : > { %v784_v63 = vpop.permute.xlu0 %783  ;;  %v681_v0 = vadd.f32 %v668_v59, %v2616_v61 }
 0x18d   : > { %v798_v15 = vadd.f32 %v784_v63, %v2619_v1 }
 0x18e   : > { %2125 = vtanh.f32 %v681_v0 }
 0x190   : > { %v788_v62 = vpop.permute.xlu1 %787  ;;  %v796_v4 = vpop.permute.xlu0 %795 }
 0x191   : > { %v799_v11 = vadd.f32 %v788_v62, %v2616_v61  ;;  %v801_v21 = vadd.f32 %v796_v4, %v2625_v9 }
 0x195   : > { %v663_v2 = vpop.permute.xlu1 %662  ;;  %v673_v7 = vpop.permute.xlu0 %672 }
 0x196   : > { %v680_v3 = vadd.f32 %v663_v2, %v2619_v1  ;;  %v682_v8 = vadd.f32 %v673_v7, %v2622_v5 }
 0x198   : > { %2127 = vtanh.f32 %v680_v3  ;;  %v2126_v13 = vpop.eup %2125 }
 0x199   : > { %2129 = vtanh.f32 %v682_v8 }
 0x19a   : > { %v896_v6 = vpop.permute.xlu1 %895  ;;  %v900_v22 = vpop.permute.xlu0 %899 }
 0x19b   : > { %v910_v25 = vadd.f32 %v896_v6, %v2619_v1  ;;  %v911_v27 = vadd.f32 %v900_v22, %v2616_v61 }
 0x19f   : > { %v678_v10 = vpop.permute.xlu1 %677  ;;  %v1008_v33 = vpop.permute.xlu0 %1007 }
 0x1a0   : > { %v683_v12 = vadd.f32 %v678_v10, %v2625_v9  ;;  %v1022_v40 = vadd.f32 %v1008_v33, %v2619_v1 }
 0x1a2   : > { %v2128_v14 = vpop.eup %2127  ;;  %2131 = vtanh.f32 %v683_v12 }
 0x1a3   : > { %v1983_v16 = vpack.c.bf16 %v2126_v13, %v2128_v14  ;;  %2133 = vtanh.f32 %v799_v11  ;;  %v2130_v19 = vpop.eup %2129  ;;  %v1020_v42 = vpop.permute.xlu0 %1019 }
 0x1a4   : > { %v908_v17 = vpop.permute.xlu1 %907  ;;  %2135 = vtanh.f32 %v798_v15  ;;  %v1025_v47 = vadd.f32 %v1020_v42, %v2625_v9 }
 0x1a5   : > { %1984 = vmatpush3.bf16.msra.mxu0 %v1983_v16  ;;  %2137 = vtanh.f32 %v801_v21  ;;  %v913_v34 = vadd.f32 %v908_v17, %v2625_v9 }
 0x1a6   : > { %1985 = vmatprep.subr.bf16.mxu0 %v2333_v46 }
 0x1a8   : > { %v1124_v50 = vpop.permute.xlu0 %1123 }
 0x1a9   : > { %v1012_v18 = vpop.permute.xlu1 %1011  ;;  %v1135_v56 = vadd.f32 %v1124_v50, %v2616_v61 }
 0x1aa   : > { %v1023_v36 = vadd.f32 %v1012_v18, %v2616_v61 }
 0x1ac   : > { %v2132_v20 = vpop.eup %2131 }
 0x1ad   : > { %v1986_v23 = vpack.c.bf16 %v2132_v20, %v2130_v19  ;;  %v2134_v24 = vpop.eup %2133  ;;  %v1232_v62 = vpop.permute.xlu0 %1231 }
 0x1ae   : > { %v792_v26 = vpop.permute.xlu1 %791  ;;  %v2136_v30 = vpop.eup %2135  ;;  %v1246_v8 = vadd.f32 %v1232_v62, %v2619_v1 }
 0x1af   : > { %v800_v28 = vadd.f32 %v792_v26, %v2622_v5  ;;  %1987 = vmatpush3.bf16.msra.mxu0 %v1986_v23  ;;  %v1989_v31 = vpack.c.bf16 %v2134_v24, %v2136_v30  ;;  %v2138_v38 = vpop.eup %2137 }
 0x1b0   : > { %1988 = vmatprep.subr.bf16.mxu0 %v2333_v46 }
 0x1b1   : > { %2139 = vtanh.f32 %v800_v28  ;;  %v1244_v10 = vpop.permute.xlu0 %1243 }
 0x1b2   : > { %2141 = vtanh.f32 %v910_v25  ;;  %1855 = vmatmul.mubr.msk.f32.vlgmr.msra.gmra.mrb[4].mxu0 %vm689_vm4, %v2638_v29  ;;  %v1249_v15 = vadd.f32 %v1244_v10, %v2625_v9 }
 0x1b3   : > { %2143 = vtanh.f32 %v911_v27  ;;  %v1120_v32 = vpop.permute.xlu1 %1119  ;;  %1990 = vmatpush3.bf16.msra.mxu0 %v1989_v31  ;;  %1865 = vmatprep.mubr.msk.f32.mxu0 %vm2336_vm3, %v2337_v49 }
 0x1b4   : > { %1991 = vmatprep.subr.bf16.mxu0 %v2333_v46  ;;  %2145 = vtanh.f32 %v913_v34  ;;  %v1134_v52 = vadd.f32 %v1120_v32, %v2619_v1 }
 0x1b6   : > { %v1348_v17 = vpop.permute.xlu0 %1347 }
 0x1b7   : > { %v1359_v23 = vadd.f32 %v1348_v17, %v2616_v61 }
 0x1b8   : > { %v904_v35 = vpop.permute.xlu1 %903 }
 0x1b9   : > { %v912_v37 = vadd.f32 %v904_v35, %v2622_v5 }
 0x1bb   : > { %v2140_v39 = vpop.eup %2139  ;;  %2147 = vtanh.f32 %v912_v37  ;;  %v1456_v28 = vpop.permute.xlu0 %1455 }
 0x1bc   : > { %v2142_v41 = vpop.eup %2141  ;;  %v1992_v43 = vpack.c.bf16 %v2138_v38, %v2140_v39  ;;  %2149 = vtanh.f32 %v1023_v36  ;;  %v1470_v35 = vadd.f32 %v1456_v28, %v2619_v1 }
 0x1bd   : > { %v2144_v44 = vpop.eup %2143  ;;  %v1132_v45 = vpop.permute.xlu1 %1131  ;;  %2151 = vtanh.f32 %v1022_v40 }
 0x1be   : > { %1993 = vmatpush3.bf16.msra.mxu0 %v1992_v43  ;;  %v1995_v48 = vpack.c.bf16 %v2144_v44, %v2142_v41  ;;  %v2146_v54 = vpop.eup %2145  ;;  %2153 = vtanh.f32 %v1025_v47  ;;  %v1137_v63 = vadd.f32 %v1132_v45, %v2625_v9 }
 0x1bf   : > { %1994 = vmatprep.subr.bf16.mxu0 %v2333_v46  ;;  %v1468_v37 = vpop.permute.xlu0 %1467 }
 0x1c0   : > { %v1473_v42 = vadd.f32 %v1468_v37, %v2625_v9 }
 0x1c1   : > { %1866 = vmatmul.mubr.msk.f32.vlgmr.msra.gmra.mrb[6].mxu0 %vm689_vm4, %v2638_v29 }
 0x1c2   : > { %v1016_v51 = vpop.permute.xlu1 %1015  ;;  %1996 = vmatpush3.bf16.msra.mxu0 %v1995_v48  ;;  %1876 = vmatprep.mubr.msk.f32.mxu0 %vm2336_vm3, %v2337_v49 }
 0x1c3   : > { %v1024_v53 = vadd.f32 %v1016_v51, %v2622_v5  ;;  %1997 = vmatprep.subr.bf16.mxu0 %v2333_v46 }
 0x1c5   : > { %v2148_v55 = vpop.eup %2147  ;;  %2155 = vtanh.f32 %v1024_v53 }
 0x1c6   : > { %v1998_v57 = vpack.c.bf16 %v2146_v54, %v2148_v55  ;;  %v2150_v58 = vpop.eup %2149  ;;  %2157 = vtanh.f32 %v1134_v52 }
 0x1c7   : > { %v1236_v59 = vpop.permute.xlu1 %1235  ;;  %v2152_v60 = vpop.eup %2151  ;;  %2159 = vtanh.f32 %v1135_v56 }
 0x1c8   : > { %1999 = vmatpush3.bf16.msra.mxu0 %v1998_v57  ;;  %v2001_v0 = vpack.c.bf16 %v2150_v58, %v2152_v60  ;;  %v1247_v3 = vadd.f32 %v1236_v59, %v2616_v61  ;;  %v2154_v6 = vpop.eup %2153  ;;  %2161 = vtanh.f32 %v1137_v63 }
 0x1c9   : > { %2000 = vmatprep.subr.bf16.mxu0 %v2333_v46 }
 0x1cb   : > { %1877 = vmatmul.mubr.msk.f32.vlgmr.msra.gmra.mrb[8].mxu0 %vm689_vm4, %v2638_v29 }
 0x1cc   : > { %v1128_v2 = vpop.permute.xlu1 %1127  ;;  %2002 = vmatpush3.bf16.msra.mxu0 %v2001_v0  ;;  %1887 = vmatprep.mubr.msk.f32.mxu0 %vm2336_vm3, %v2337_v49 }
 0x1cd   : > { %v1136_v4 = vadd.f32 %v1128_v2, %v2622_v5  ;;  %2003 = vmatprep.subr.bf16.mxu0 %v2333_v46 }
 0x1cf   : > { %v2156_v7 = vpop.eup %2155  ;;  %2163 = vtanh.f32 %v1136_v4 }
 0x1d0   : > { %v2004_v11 = vpack.c.bf16 %v2154_v6, %v2156_v7  ;;  %v2158_v12 = vpop.eup %2157  ;;  %2165 = vtanh.f32 %v1247_v3  ;;  %v658_v6 = vlaneseq  ;;  %v918_v7 = vld [vmem:[%s2711_s12 + $0x2] sm:$0x1] }
 0x1d1   : > { %v1344_v13 = vpop.permute.xlu1 %1343  ;;  %v2160_v14 = vpop.eup %2159  ;;  %2167 = vtanh.f32 %v1246_v8 }
 0x1d2   : > { %2005 = vmatpush3.bf16.msra.mxu0 %v2004_v11  ;;  %v2007_v16 = vpack.c.bf16 %v2160_v14, %v2158_v12  ;;  %v1358_v19 = vadd.f32 %v1344_v13, %v2619_v1  ;;  %v2162_v21 = vpop.eup %2161  ;;  %2169 = vtanh.f32 %v1249_v15  ;;  %v659_v12 = vand.u32 127, %v658_v6 }
 0x1d3   : > { %2006 = vmatprep.subr.bf16.mxu0 %v2333_v46  ;;  %v774_v13 = vstv %s360_s14  ;;  %v777_v14 = vstv %s776_s23  ;;  %s1581_s14 = sshll.u32 %s2746_s0, 4  ;;  %s2802_s14 = int_to_ptr.vmem [resolvable:$true] %s1581_s14 }
 0x1d4   : > { %vm2728_vm5 = vcmp.lt.s32.totalorder %v659_v12, %v774_v13  ;;  %vm2732_vm6 = vcmp.eq.s32.totalorder %v777_v14, 1  ;;  %v1478_v14 = vld [vmem:[%s2711_s12 + $0x7] sm:$0x1]  ;;  %s2245_s20 = scalar_lea.vmem %s2802_s14, 128 }
 0x1d5   : > { %1888 = vmatmul.mubr.msk.f32.vlgmr.msra.gmra.mrb[10].mxu0 %vm689_vm4, %v2638_v29  ;;  %vm779_vm7 = vmand %vm2732_vm6, %vm2728_vm5  ;;  %p2246_p3 = scmp.ne.s32.totalorder %s2802_s14, %s2245_s20 }
 0x1d6   : > { %v1240_v18 = vpop.permute.xlu1 %1239  ;;  %2008 = vmatpush3.bf16.msra.mxu0 %v2007_v16  ;;  %1898 = vmatprep.mubr.msk.f32.mxu0 %vm2336_vm3, %v2337_v49 }
 0x1d7   : > { %v1248_v20 = vadd.f32 %v1240_v18, %v2622_v5  ;;  %2009 = vmatprep.subr.bf16.mxu0 %v2333_v46  ;;  %p2247_p5 = pnand %p2246_p3, %p2437_p0 }
 0x1d9   : > { %v2164_v22 = vpop.eup %2163  ;;  %2171 = vtanh.f32 %v1248_v20  ;;  %p2248_p6 = pneg %p2247_p5 }
 0x1da   : > { %v2010_v24 = vpack.c.bf16 %v2162_v21, %v2164_v22  ;;  %v2166_v25 = vpop.eup %2165  ;;  %2173 = vtanh.f32 %v1358_v19 }
 0x1db   : > { %v1356_v26 = vpop.permute.xlu1 %1355  ;;  %v2168_v27 = vpop.eup %2167  ;;  %2175 = vtanh.f32 %v1359_v23  ;;  %v1030_v23 = vld [vmem:[%s2711_s12 + $0x3] sm:$0x1] }
 0x1dc   : > { %2011 = vmatpush3.bf16.msra.mxu0 %v2010_v24  ;;  %v1361_v30 = vadd.f32 %v1356_v26, %v2625_v9  ;;  %v2013_v31 = vpack.c.bf16 %v2166_v25, %v2168_v27  ;;  %v2170_v34 = vpop.eup %2169 }
 0x1dd   : > { %2012 = vmatprep.subr.bf16.mxu0 %v2333_v46 }
 0x1de   : > { %2177 = vtanh.f32 %v1361_v30 }
 0x1df   : > { %v1352_v32 = vpop.permute.xlu1 %1351  ;;  %1899 = vmatmul.mubr.msk.f32.vlgmr.msra.gmra.mrb[12].mxu0 %vm689_vm4, %v2638_v29 }
 0x1e0   : > { %v1360_v33 = vadd.f32 %v1352_v32, %v2622_v5  ;;  %2014 = vmatpush3.bf16.msra.mxu0 %v2013_v31  ;;  %1909 = vmatprep.mubr.msk.f32.mxu0 %vm2336_vm3, %v2337_v49 }
 0x1e1   : > { %2015 = vmatprep.subr.bf16.mxu0 %v2333_v46 }
 0x1e2   : > { %2179 = vtanh.f32 %v1360_v33 }
 0x1e3   : > { %v2172_v36 = vpop.eup %2171  ;;  %2181 = vtanh.f32 %v1470_v35  ;;  %v889_v35 = vstv %s888_s13  ;;  %s2800_s13 = scalar_lea.hbm %s2858_s9, %s1731_s15 }
 0x1e4   : > { %v1460_v38 = vpop.permute.xlu1 %1459  ;;  %v2016_v39 = vpack.c.bf16 %v2170_v34, %v2172_v36  ;;  %v2174_v40 = vpop.eup %2173  ;;  %v1142_v36 = vld [vmem:[%s2711_s12 + $0x4] sm:$0x1]  ;;  %vm890_vm8 = vcmp.eq.s32.totalorder %v889_v35, 1 }
 0x1e5   : > { %v1471_v41 = vadd.f32 %v1460_v38, %v2616_v61  ;;  %v2176_v43 = vpop.eup %2175  ;;  %vm891_vm9 = vmand %vm890_vm8, %vm2728_vm5 }
 0x1e6   : > { %2017 = vmatpush3.bf16.msra.mxu0 %v2016_v39  ;;  %v2019_v45 = vpack.c.bf16 %v2176_v43, %v2174_v40 }
 0x1e7   : > { %2183 = vtanh.f32 %v1471_v41  ;;  %2018 = vmatprep.subr.bf16.mxu0 %v2333_v46 }
 0x1e8   : > { %v1464_v44 = vpop.permute.xlu1 %1463  ;;  %2185 = vtanh.f32 %v1473_v42  ;;  %v2178_v61 = vpop.eup %2177 }
 0x1e9   : > { %v1472_v1 = vadd.f32 %v1464_v44, %v2622_v5  ;;  %1910 = vmatmul.mubr.msk.f32.vlgmr.msra.gmra.mrb[14].mxu0 %vm689_vm4, %v2638_v29 }
 0x1ea   : > { %2020 = vmatpush3.bf16.msra.mxu0 %v2019_v45  ;;  %1920 = vmatprep.mubr.msk.f32.mxu0 %vm2336_vm3, %v2337_v49 }
 0x1eb   : > { %2187 = vtanh.f32 %v1472_v1  ;;  %2021 = vmatprep.subr.bf16.mxu0 %v2333_v46 }
 0x1ec   : > { %v2180_v9 = vpop.eup %2179 }
 0x1ed   : > { %v2022_v47 = vpack.c.bf16 %v2178_v61, %v2180_v9  ;;  %v2182_v48 = vpop.eup %2181 }
 0x1ef   : > { %2023 = vmatpush3.bf16.msra.mxu0 %v2022_v47 }
 0x1f0   : > { %2024 = vmatprep.subr.bf16.mxu0 %v2333_v46 }
 0x1f1   : > { %v2184_v5 = vpop.eup %2183 }
 0x1f2   : > { %1921 = vmatmul.mubr.msk.f32.vlgmr.msra.gmra.mrb[16].mxu0 %vm689_vm4, %v2638_v29  ;;  %v2025_v50 = vpack.c.bf16 %v2184_v5, %v2182_v48  ;;  %v2186_v51 = vpop.eup %2185  ;;  %v1001_v48 = vstv %s1000_s24  ;;  %v1254_v5 = vld [vmem:[%s2711_s12 + $0x5] sm:$0x1]  ;;  %s1567_s24 = scalar_lea.sflag [#allocation6], %s337_s16 }
 0x1f3   : > { %1931 = vmatprep.mubr.msk.f32.mxu0 %vm2336_vm3, %v2337_v49  ;;  %v688_v49 = vld [vmem:[%s2711_s12] sm:$0x1]  ;;  %vm1002_vm10 = vcmp.eq.s32.totalorder %v1001_v48, 1 }
 0x1f4   : > { %2026 = vmatpush3.bf16.msra.mxu0 %v2025_v50  ;;  %vm1003_vm11 = vmand %vm1002_vm10, %vm2728_vm5 }
 0x1f5   : > { %v2188_v52 = vpop.eup %2187  ;;  %2027 = vmatprep.subr.bf16.mxu0 %v2333_v46 }
 0x1f6   : > { %v2028_v53 = vpack.c.bf16 %v2186_v51, %v2188_v52 }
 0x1f8   : > { %2029 = vmatpush3.bf16.msra.mxu0 %v2028_v53 }
 0x1fb   : > { %1932 = vmatmul.mubr.msk.f32.vlgmr.msra.gmra.mrb[18].mxu0 %vm689_vm4, %v2638_v29  ;;  %v806_v29 = vld [vmem:[%s2711_s12 + $0x1] sm:$0x1] }
 0x285   : > { %v759_v54 = vpop.f32.mrb[4].mxu0 }
 0x286   : > { %v760_v55 = vadd.f32 %v759_v54, %v688_v49  ;;  %v1856_v56 = vpop.f32.mrb[5].mxu0 }
 0x288   : > { %v764_v57 = vand.u32 2147483647, %v760_v55  ;;  %v763_v21 = vmin.f32 %v760_v55, 0.0 }
 0x28a   : > { %v765_v46 = vsub.f32 0.0, %v764_v57 }
 0x28c   : > { %v766_v58 = vmul.f32 1.442695, %v765_v46 }
 0x28e   : > { %2189 = vpow2.f32 %v766_v58 }
 0x294   : > { %v873_v59 = vpop.f32.mrb[6].mxu0 }
 0x295   : > { %v2718_v60 = vadd.f32 %v873_v59, %v806_v29  ;;  %v1867_v62 = vpop.f32.mrb[7].mxu0 }
 0x296   : > { %v1113_v62 = vstv %s1112_s26  ;;  %s2340_s26 = smov [#allocation5]  }
 0x297   : > { %v878_v63 = vand.u32 2147483647, %v2718_v60  ;;  %v877_v43 = vmin.f32 %v2718_v60, 0.0  ;;  %v1366_v60 = vld [vmem:[%s2711_s12 + $0x6] sm:$0x1]  ;;  %vm1114_vm12 = vcmp.eq.s32.totalorder %v1113_v62, 1 }
 0x298   : > { %v2190_v0 = vpop.eup %2189  ;;  %vm1115_vm13 = vmand %vm1114_vm12, %vm2728_vm5  ;;  %s1560_s12 = scalar_select %p1729_p2, 1, 0 }
 0x299   : > { %v768_v2 = vadd.f32 1.0, %v2190_v0  ;;  %v879_v3 = vsub.f32 0.0, %v878_v63 }
 0x29b   : > { %2191 = vlog2.f32 %v768_v2  ;;  %v880_v4 = vmul.f32 1.442695, %v879_v3 }
 0x29d   : > { %2193 = vpow2.f32 %v880_v4 }
 0x29e   : > { %v985_v8 = vpop.f32.mrb[8].mxu0 }
 0x29f   : > { %v2724_v10 = vadd.f32 %v985_v8, %v918_v7  ;;  %v1878_v11 = vpop.f32.mrb[9].mxu0 }
 0x2a1   : > { %v990_v15 = vand.u32 2147483647, %v2724_v10  ;;  %v989_v55 = vmin.f32 %v2724_v10, 0.0 }
 0x2a3   : > { %v991_v16 = vsub.f32 0.0, %v990_v15 }
 0x2a5   : > { %v2192_v19 = vpop.eup %2191  ;;  %v992_v20 = vmul.f32 1.442695, %v991_v16  ;;  %v1225_v16 = vstv %s1224_s28  ;;  %s2249_s28 = sshll.u32 %s2340_s26, 4  ;;  %s2250_s28 = int_to_ptr.vmem [resolvable:$false] %s2249_s28 }
 0x2a6   : > { %v770_v22 = vmul.f32 0.6931472, %v2192_v19  ;;  %vm1226_vm14 = vcmp.eq.s32.totalorder %v1225_v16, 1  ;;  %p2252_p7 = scmp.lt.s32.totalorder %s2802_s14, %s2250_s28 }
 0x2a7   : > { %v2194_v24 = vpop.eup %2193  ;;  %2195 = vpow2.f32 %v992_v20  ;;  %vm1227_vm15 = vmand %vm1226_vm14, %vm2728_vm5 }
 0x2a8   : > { %v771_v25 = vsub.f32 %v763_v21, %v770_v22  ;;  %v882_v26 = vadd.f32 1.0, %v2194_v24  ;;  %v1097_v27 = vpop.f32.mrb[10].mxu0 }
 0x2a9   : > { %v2744_v28 = vadd.f32 %v1097_v27, %v1030_v23  ;;  %v1889_v30 = vpop.f32.mrb[11].mxu0 }
 0x2aa   : > { %v780_v31 = vsel %vm779_vm7, %v771_v25, -1000.0  ;;  %2197 = vlog2.f32 %v882_v26 }
 0x2ab   : > { %781 = vst [vmem:[%s2746_s0] sm:$0x1] %v780_v31  ;;  %v1102_v32 = vand.u32 2147483647, %v2744_v28  ;;  %v1101_v8 = vmin.f32 %v2744_v28, 0.0 }
 0x2ad   : > { %v1103_v33 = vsub.f32 0.0, %v1102_v32 }
 0x2af   : > { %v1104_v34 = vmul.f32 1.442695, %v1103_v33  ;;  %v1337_v33 = vstv %s1336_s10  ;;  %s2251_s10 = scalar_lea.vmem %s2250_s28, 256 }
 0x2b0   : > { %vm1338_vm0 = vcmp.eq.s32.totalorder %v1337_v33, 1  ;;  %p2253_p8 = scmp.lt.s32.totalorder %s2251_s10, %s2245_s20 }
 0x2b1   : > { %v2196_v37 = vpop.eup %2195  ;;  %2199 = vpow2.f32 %v1104_v34  ;;  %vm1339_vm1 = vmand %vm1338_vm0, %vm2728_vm5 }
 0x2b2   : > { %v994_v38 = vadd.f32 1.0, %v2196_v37  ;;  %v1209_v39 = vpop.f32.mrb[12].mxu0  ;;  %p2254_p9 = por %p2253_p8, %p2252_p7 }
 0x2b3   : > { %v2752_v40 = vadd.f32 %v1209_v39, %v1142_v36  ;;  %v1900_v41 = vpop.f32.mrb[13].mxu0 }
 0x2b4   : > { %v2198_v42 = vpop.eup %2197  ;;  %2201 = vlog2.f32 %v994_v38  ;;  %v1449_v41 = vstv %s1448_s11  ;;  %p2255_p10 = pnand %p2254_p9, %p2248_p6 }
 0x2b5   : > { %v884_v44 = vmul.f32 0.6931472, %v2198_v42  ;;  %v1214_v45 = vand.u32 2147483647, %v2752_v40  ;;  %v1213_v25 = vmin.f32 %v2752_v40, 0.0  ;;  %vm1450_vm2 = vcmp.eq.s32.totalorder %v1449_v41, 1 }
 0x2b6   : > { %vm1451_vm3 = vmand %vm1450_vm2, %vm2728_vm5 }
 0x2b7   : > { %v885_v1 = vsub.f32 %v877_v43, %v884_v44  ;;  %v1215_v61 = vsub.f32 0.0, %v1214_v45 }
 0x2b9   : > { %v892_v9 = vsel %vm891_vm9, %v885_v1, -1000.0  ;;  %v1216_v47 = vmul.f32 1.442695, %v1215_v61 }
 0x2ba   : > { %893 = vst [vmem:[%s2746_s0 + $0x1] sm:$0x1] %v892_v9  ;;  %v1561_v9 = vstv %s1560_s12 }
 0x2bb   : > { %v2200_v50 = vpop.eup %2199  ;;  %2203 = vpow2.f32 %v1216_v47  ;;  %vm1562_vm4 = vcmp.eq.s32.totalorder %v1561_v9, 1 }
 0x2bc   : > { %v1106_v51 = vadd.f32 1.0, %v2200_v50  ;;  %v1321_v52 = vpop.f32.mrb[14].mxu0  ;;  %vm1563_vm6 = vmand %vm1562_vm4, %vm2728_vm5 }
 0x2bd   : > { %v2761_v53 = vadd.f32 %v1321_v52, %v1254_v5  ;;  %v1911_v49 = vpop.f32.mrb[15].mxu0 }
 0x2be   : > { %v2202_v54 = vpop.eup %2201  ;;  %2205 = vlog2.f32 %v1106_v51 }
 0x2bf   : > { %v996_v56 = vmul.f32 0.6931472, %v2202_v54  ;;  %v1326_v57 = vand.u32 2147483647, %v2761_v53  ;;  %v1325_v36 = vmin.f32 %v2761_v53, 0.0 }
 0x2c1   : > { %v997_v46 = vsub.f32 %v989_v55, %v996_v56  ;;  %v1327_v58 = vsub.f32 0.0, %v1326_v57 }
 0x2c3   : > { %v1004_v29 = vsel %vm1003_vm11, %v997_v46, -1000.0  ;;  %v1328_v59 = vmul.f32 1.442695, %v1327_v58 }
 0x2c4   : > { %1005 = vst [vmem:[%s2746_s0 + $0x2] sm:$0x1] %v1004_v29 }
 0x2c5   : > { %v2204_v63 = vpop.eup %2203  ;;  %2207 = vpow2.f32 %v1328_v59  ;;  %v1433_v0 = vpop.f32.mrb[16].mxu0 }
 0x2c6   : > { %v1218_v2 = vadd.f32 1.0, %v2204_v63  ;;  %v2770_v3 = vadd.f32 %v1433_v0, %v1366_v60  ;;  %v1922_v4 = vpop.f32.mrb[17].mxu0 }
 0x2c8   : > { %v2206_v6 = vpop.eup %2205  ;;  %2209 = vlog2.f32 %v1218_v2  ;;  %v1438_v7 = vand.u32 2147483647, %v2770_v3  ;;  %v1437_v44 = vmin.f32 %v2770_v3, 0.0 }
 0x2c9   : > { %v1108_v10 = vmul.f32 0.6931472, %v2206_v6 }
 0x2ca   : > { %v1439_v11 = vsub.f32 0.0, %v1438_v7 }
 0x2cb   : > { %v1109_v12 = vsub.f32 %v1101_v8, %v1108_v10 }
 0x2cc   : > { %v1440_v13 = vmul.f32 1.442695, %v1439_v11 }
 0x2cd   : > { %v1116_v15 = vsel %vm1115_vm13, %v1109_v12, -1000.0 }
 0x2ce   : > { %1117 = vst [vmem:[%s2746_s0 + $0x3] sm:$0x1] %v1116_v15  ;;  %2211 = vpow2.f32 %v1440_v13  ;;  %v1545_v18 = vpop.f32.mrb[18].mxu0 }
 0x2cf   : > { %v2208_v19 = vpop.eup %2207  ;;  %v1546_v20 = vadd.f32 %v1545_v18, %v1478_v14  ;;  %v1933_v21 = vpop.f32.mrb[19].mxu0 }
 0x2d0   : > { %v1330_v22 = vadd.f32 1.0, %v2208_v19 }
 0x2d1   : > { %v1550_v23 = vand.u32 2147483647, %v1546_v20  ;;  %v1549_v48 = vmin.f32 %v1546_v20, 0.0 }
 0x2d2   : > { %v2210_v24 = vpop.eup %2209  ;;  %2213 = vlog2.f32 %v1330_v22 }
 0x2d3   : > { %v1220_v26 = vmul.f32 0.6931472, %v2210_v24  ;;  %v1551_v27 = vsub.f32 0.0, %v1550_v23 }
 0x2d5   : > { %v1221_v28 = vsub.f32 %v1213_v25, %v1220_v26  ;;  %v1552_v30 = vmul.f32 1.442695, %v1551_v27 }
 0x2d7   : > { %v1228_v31 = vsel %vm1227_vm15, %v1221_v28, -1000.0  ;;  %2215 = vpow2.f32 %v1552_v30 }
 0x2d8   : > { %v2212_v32 = vpop.eup %2211  ;;  %1229 = vst [vmem:[%s2746_s0 + $0x4] sm:$0x1] %v1228_v31 }
 0x2d9   : > { %v1442_v34 = vadd.f32 1.0, %v2212_v32 }
 0x2db   : > { %2217 = vlog2.f32 %v1442_v34 }
 0x2dc   : > { %v2214_v35 = vpop.eup %2213 }
 0x2dd   : > { %v1332_v37 = vmul.f32 0.6931472, %v2214_v35 }
 0x2df   : > { %v1333_v38 = vsub.f32 %v1325_v36, %v1332_v37 }
 0x2e1   : > { %v2216_v39 = vpop.eup %2215  ;;  %v1340_v40 = vsel %vm1339_vm1, %v1333_v38, -1000.0 }
 0x2e2   : > { %1341 = vst [vmem:[%s2746_s0 + $0x5] sm:$0x1] %v1340_v40  ;;  %v1554_v42 = vadd.f32 1.0, %v2216_v39 }
 0x2e4   : > { %2219 = vlog2.f32 %v1554_v42 }
 0x2e5   : > { %v2218_v43 = vpop.eup %2217 }
 0x2e6   : > { %v1444_v45 = vmul.f32 0.6931472, %v2218_v43 }
 0x2e8   : > { %v1445_v1 = vsub.f32 %v1437_v44, %v1444_v45 }
 0x2ea   : > { %v1452_v61 = vsel %vm1451_vm3, %v1445_v1, -1000.0 }
 0x2eb   : > { %1453 = vst [vmem:[%s2746_s0 + $0x6] sm:$0x1] %v1452_v61 }
 0x2ee   : > { %v2220_v47 = vpop.eup %2219 }
 0x2ef   : > { %v1556_v5 = vmul.f32 0.6931472, %v2220_v47 }
 0x2f1   : > { %v1557_v50 = vsub.f32 %v1549_v48, %v1556_v5 }
 0x2f3   : > { %v1564_v51 = vsel %vm1563_vm6, %v1557_v50, -1000.0 }
 0x2f4   : > { %1565 = vst [vmem:[%s2746_s0 + $0x7] sm:$0x1] %v1564_v51 }
 0x2f5   : > { %2258 = shalt.err (!%p2255_p10)
}
 0x2f6   : > { %s2259_s16 = scalar_lea.hbm %s2800_s13, 128  ;;  %s2263_s12 = scalar_lea.hbm %s2858_s9, 256 }
 0x2f7   : > { %p2260_p11 = scmp.ne.s32.totalorder %s2800_s13, %s2259_s16  ;;  %p2264_p1 = scmp.lt.u32.totalorder %s2800_s13, %s2858_s9 }
 0x2f8   : > { %p2265_p2 = scmp.lt.u32.totalorder %s2263_s12, %s2259_s16  ;;  %p2267_p5 = scmp.lt.u32.totalorder %s2259_s16, %s2800_s13 }
 0x2f9   : > { %p2261_p12 = pnand %p2260_p11, %p2437_p0 }
 0x2fa   : > { %p2266_p3 = por %p2265_p2, %p2264_p1 }
 0x2fb   : > { %p2262_p13 = pneg %p2261_p12 }
 0x2fc   : > { %p2268_p6 = por %p2267_p5, %p2266_p3 }
 0x2fe   : > { %p2269_p7 = pnand %p2268_p6, %p2262_p13 }
 0x300   : > { %2272 = shalt.err (!%p2269_p7)
}
 0x301   : > { %2030 = dma.vmem_to_hbm [thread:$0]  (%p2437_p0), %s2802_s14, 128, %s2800_s13, %s1567_s24  }
 0x302 PF: > { %p2036_p8 = scmp.ge.s32.totalorder %s2325_s22, 2  ;;  %s1593_s17 = sand.u32 1, %s2305_s1  }
 0x303   : > { %s1594_s20 = scalar_lea.sflag [#allocation6], %s1593_s17 }
 0x304   : > { %p2033_p9 = pnand %p2036_p8, %p2444_p4 }
 0x306   : > { %2300 = dma.done.wait (!%p2033_p9), %s1594_s20, 128  }
 0x307   : > { %2302 = vsyncadd (!%p2033_p9), %s1594_s20, 4294967168  ;;  %s32_s22 = sadd.s32 1, %s2325_s22   ;;  %s2868_s1 = smov %s2309_s18 }
 0x308   : > { %p29_p10 = scmp.ge.s32.totalorder %s32_s22, 4   ;;  %s2869_s18 = smov %s2313_s19 }
 0x309   : > { %s2870_s19 = smov %s2450_s30  ;;  %s2871_s20 = smov %s2321_s21 }
 0x30a   : > { %s2872_s21 = smov %s2874_s25  ;;  %31 = sbr.rel (!%p29_p10) target bundleno = 29 (0x1d), region = 89 }
 0x311   :  { %1599 = vsyncpa [#allocation6], 1 }
 0x312   :  { %1601 = vsyncpa [#allocation6 + $0x1], 1 }

</bundles_post_ra>
